<compile_context>
chip_gen: v7x
topology: tpu7x:2x2x1
jax: 0.10.0
libtpu: 0.0.40
codegen_flags: <defaults>
</compile_context>

<pallas_src>
import functools

import jax
import jax.numpy as jnp
from jax.experimental import pallas as pl
from jax.experimental.pallas import tpu as pltpu

# Logical (PyTorch) dims.
IN_DIM = 1 * 28 * 28   # 784
H1 = 500
H2 = 120
ZDIM = 30

# Padded hidden dims used inside the kernel (never touch HBM, so padding is free-ish).
H1P = 512
H2P = 128
HEAD_W = 128           # packed latent head width: z_mean lanes [0:30], z_log_var lanes [64:94]
LOGVAR_LANE = 64       # lane offset of z_log_var inside the packed head


def _round_up(n, m):
    return ((n + m - 1) // m) * m


def _vae_kernel(training, *refs):
    """One batch tile of the full VAE forward (encoder -> reparam -> decoder)."""
    if training:
        (x_ref, eps_ref,
         w1, b1, w2, b2, wh, bh, wd1, bd1, wd2, bd2, wd3, bd3,
         recon_ref, head_ref) = refs
    else:
        eps_ref = None
        (x_ref,
         w1, b1, w2, b2, wh, bh, wd1, bd1, wd2, bd2, wd3, bd3,
         recon_ref, head_ref) = refs

    bf16 = jnp.bfloat16
    f32 = jnp.float32

    # ----- encoder: Linear(784,500)+ReLU, Linear(500,120)+ReLU (hidden dims padded) -----
    x = x_ref[...]                                   # already bf16
    h = jnp.dot(x, w1[...], preferred_element_type=f32) + b1[...]
    h = jnp.maximum(h, 0.0)
    h = jnp.dot(h.astype(bf16), w2[...], preferred_element_type=f32) + b2[...]
    h = jnp.maximum(h, 0.0)

    # ----- packed latent head: one lane-dense (TB, 128) matmul -----
    head = jnp.dot(h.astype(bf16), wh[...], preferred_element_type=f32) + bh[...]
    head_ref[...] = head                             # [ z_mean | 0 | z_log_var | 0 ]

    if training:
        # Align z_log_var (lanes 64:94) over z_mean (lanes 0:30). Axis width is 128, so a
        # rotation by 64 is symmetric (+64 == -64). XLU op, effectively free.
        lv = pltpu.roll(head, shift=LOGVAR_LANE, axis=1)
        # Mask the upper half before exp so a huge z_mean can never produce inf*0 = nan.
        lane = jax.lax.broadcasted_iota(jnp.int32, head.shape, 1)
        std = jnp.exp(0.5 * jnp.where(lane < LOGVAR_LANE, lv, 0.0))
        z = eps_ref[...].astype(f32) * std + head    # eps padded lanes are exactly zero
    else:
        z = head
    # Lanes >= 64 of z still carry z_log_var; wd1's zero rows there make them inert.

    # ----- decoder: Linear(30,120)+ReLU, Linear(120,500)+ReLU, Linear(500,784)+Sigmoid -----
    d = jnp.dot(z.astype(bf16), wd1[...], preferred_element_type=f32) + bd1[...]
    d = jnp.maximum(d, 0.0)
    d = jnp.dot(d.astype(bf16), wd2[...], preferred_element_type=f32) + bd2[...]
    d = jnp.maximum(d, 0.0)
    logits = jnp.dot(d.astype(bf16), wd3[...], preferred_element_type=f32) + bd3[...]

    # sigmoid(x) == 0.5*tanh(0.5*x) + 0.5 exactly; single EUP op per element.
    recon_ref[...] = (0.5 * jnp.tanh(0.5 * logits) + 0.5).astype(recon_ref.dtype)


# ---------------------------------------------------------------------------
# Parameter handling
# ---------------------------------------------------------------------------

def init_params(key):
    """Logical params (f32, (in,out) weights, (out,) biases), PyTorch nn.Linear default init:
    weight and bias both ~ U(-1/sqrt(in_features), 1/sqrt(in_features))."""
    layer_dims = [
        ("w1", "b1", IN_DIM, H1),
        ("w2", "b2", H1, H2),
        ("wm", "bm", H2, ZDIM),
        ("wv", "bv", H2, ZDIM),
        ("wd1", "bd1", ZDIM, H2),
        ("wd2", "bd2", H2, H1),
        ("wd3", "bd3", H1, IN_DIM),
    ]
    keys = jax.random.split(key, 2 * len(layer_dims))
    params = {}
    for idx, (wn, bn, din, dout) in enumerate(layer_dims):
        bound = 1.0 / float(din) ** 0.5
        params[wn] = jax.random.uniform(keys[2 * idx], (din, dout), jnp.float32, -bound, bound)
        params[bn] = jax.random.uniform(keys[2 * idx + 1], (dout,), jnp.float32, -bound, bound)
    return params


def _pad_bias(b, cols):
    out = jnp.zeros((1, cols), jnp.float32)
    return out.at[0, : b.shape[0]].set(b.astype(jnp.float32))


def pack_params(params):
    """Pad hidden dims, pack the two latent heads into one 128-lane slab, cast weights to bf16.

    Call once and cache/reuse the result; only the packed tuple is fed to vae_forward.
    Padded rows/cols are exactly zero (required so padded lanes stay inert through the net).
    """
    wdt = jnp.bfloat16
    w1 = jnp.pad(params["w1"].astype(wdt), ((0, 0), (0, H1P - H1)))          # (784, 512)
    b1 = _pad_bias(params["b1"], H1P)
    w2 = jnp.pad(params["w2"].astype(wdt), ((0, H1P - H1), (0, H2P - H2)))   # (512, 128)
    b2 = _pad_bias(params["b2"], H2P)
    wh = jnp.zeros((H2P, HEAD_W), wdt)                                       # (128, 128)
    wh = wh.at[:H2, :ZDIM].set(params["wm"].astype(wdt))
    wh = wh.at[:H2, LOGVAR_LANE:LOGVAR_LANE + ZDIM].set(params["wv"].astype(wdt))
    bh = jnp.zeros((1, HEAD_W), jnp.float32)
    bh = bh.at[0, :ZDIM].set(params["bm"].astype(jnp.float32))
    bh = bh.at[0, LOGVAR_LANE:LOGVAR_LANE + ZDIM].set(params["bv"].astype(jnp.float32))
    wd1 = jnp.zeros((HEAD_W, H2P), wdt).at[:ZDIM, :H2].set(params["wd1"].astype(wdt))
    bd1 = _pad_bias(params["bd1"], H2P)
    wd2 = jnp.pad(params["wd2"].astype(wdt), ((0, H2P - H2), (0, H1P - H1)))  # (128, 512)
    bd2 = _pad_bias(params["bd2"], H1P)
    wd3 = jnp.pad(params["wd3"].astype(wdt), ((0, H1P - H1), (0, 0)))         # (512, 784)
    bd3 = params["bd3"].astype(jnp.float32).reshape(1, IN_DIM)
    return (w1, b1, w2, b2, wh, bh, wd1, bd1, wd2, bd2, wd3, bd3)


# ---------------------------------------------------------------------------
# Wrapper
# ---------------------------------------------------------------------------

def vae_forward(x, packed, *, training=False, eps=None, tile_b=None,
                recon_dtype=jnp.float32):
    """Full VAE forward in one pallas_call. `packed` is the output of pack_params(params).

    Returns (reconstruction, z_mean, z_log_var) with logical shapes (B,784), (B,30), (B,30).
    """
    B, F = x.shape
    assert F == IN_DIM, f"expected x with {IN_DIM} features, got {F}"
    if training and eps is None:
        raise ValueError("training=True requires reparameterization noise `eps` of shape (B, 30).")

    if tile_b is None:
        # Aim for >= ~4 grid steps so DMA pipelines behind compute and both v7x TCs get work;
        # cap at 256 rows (raise via tile_b on v5e/v6e's 128 MiB VMEM for very large batches).
        tile_b = min(256, max(16, _round_up(-(-B // 4), 16)))
    tile_b = max(16, _round_up(tile_b, 16))          # multiple of 16 for bf16 sublane packing
    b_pad = _round_up(B, tile_b)
    grid = (b_pad // tile_b,)

    # bf16 input; rows padded only when B is not a tile_b multiple (no column pad ever).
    xb = x.astype(jnp.bfloat16)
    if b_pad != B:
        xb = jnp.pad(xb, ((0, b_pad - B), (0, 0)))

    def act_spec(cols):
        return pl.BlockSpec((tile_b, cols), lambda i: (i, 0))

    def resident_spec(shape):
        # weights/biases: constant block index -> fetched once, VMEM-resident across all blocks
        return pl.BlockSpec(shape, lambda i: (0, 0))

    args = [xb]
    in_specs = [act_spec(IN_DIM)]
    if training:
        # eps in bf16, zero-padded to the 128-lane head width (tiny tensor; zeros are required
        # so padded lanes of z stay exactly zero).
        epsb = jnp.zeros((b_pad, HEAD_W), jnp.bfloat16).at[:B, :ZDIM].set(
            eps.astype(jnp.bfloat16))
        args.append(epsb)
        in_specs.append(act_spec(HEAD_W))
    args.extend(packed)
    in_specs.extend(resident_spec(p.shape) for p in packed)

    out_specs = (act_spec(IN_DIM), act_spec(HEAD_W))
    out_shape = (jax.ShapeDtypeStruct((b_pad, IN_DIM), recon_dtype),    # reconstruction
                 jax.ShapeDtypeStruct((b_pad, HEAD_W), jnp.float32))    # packed [z_mean|z_log_var]

    # Scheduling hint: DMA traffic dominates (weights resident; per-tile x/recon/head/eps).
    flops = 2 * b_pad * (IN_DIM * H1 + H1 * H2 + H2 * 2 * ZDIM
                         + ZDIM * H2 + H2 * H1 + H1 * IN_DIM)
    transcendentals = b_pad * (IN_DIM + (ZDIM if training else 0))
    w_bytes = sum(int(p.size) * p.dtype.itemsize for p in packed)
    bytes_accessed = (b_pad * IN_DIM * 2                                  # x bf16
                      + (b_pad * HEAD_W * 2 if training else 0)           # eps bf16
                      + b_pad * IN_DIM * jnp.dtype(recon_dtype).itemsize  # recon
                      + b_pad * HEAD_W * 4                                # head f32
                      + w_bytes)

    kernel = functools.partial(_vae_kernel, training)
    recon_pad, head = pl.pallas_call(
        kernel,
        grid=grid,
        in_specs=in_specs,
        out_specs=out_specs,
        out_shape=out_shape,
        compiler_params=pltpu.CompilerParams(
            dimension_semantics=("parallel",),   # batch blocks split across TCs (v7x megacore)
            vmem_limit_bytes=32 << 20,
        ),
        cost_estimate=pl.CostEstimate(flops=flops, transcendentals=transcendentals,
                                      bytes_accessed=bytes_accessed),
    )(*args)

    recon = recon_pad if b_pad == B else recon_pad[:B]
    z_mean = head[:B, :ZDIM]
    z_log_var = head[:B, LOGVAR_LANE:LOGVAR_LANE + ZDIM]
    return recon, z_mean, z_log_var


def vae_forward_ref(x, params, *, training=False, eps=None):
    """Pure-JAX f32 reference for correctness checking."""
    relu = lambda v: jnp.maximum(v, 0.0)
    h = relu(x @ params["w1"] + params["b1"])
    h = relu(h @ params["w2"] + params["b2"])
    z_mean = h @ params["wm"] + params["bm"]
    z_log_var = h @ params["wv"] + params["bv"]
    z = eps * jnp.exp(0.5 * z_log_var) + z_mean if training else z_mean
    d = relu(z @ params["wd1"] + params["bd1"])
    d = relu(d @ params["wd2"] + params["bd2"])
    recon = jax.nn.sigmoid(d @ params["wd3"] + params["bd3"])
    return recon, z_mean, z_log_var


if __name__ == "__main__":
    key = jax.random.PRNGKey(0)
    pkey, xkey, ekey, xkey2 = jax.random.split(key, 4)
    params = init_params(pkey)
    packed = pack_params(params)     # pack once; reuse across forwards

    def check(got, want, tol):
        assert got.shape == want.shape and got.dtype == want.dtype
        err = float(jnp.max(jnp.abs(got - want)))
        assert err < tol, f"mismatch vs reference: max abs err = {err}"

    # Eval and training paths; B=64 with default tile_b=16 -> grid=(4,) (multi-block, pipelined).
    B = 64
    x = jax.random.uniform(xkey, (B, IN_DIM), jnp.float32)
    eps = jax.random.normal(ekey, (B, ZDIM), jnp.float32)

    out_eval = vae_forward(x, packed, training=False)
    out_train = vae_forward(x, packed, training=True, eps=eps)
    jax.block_until_ready((out_eval, out_train))

    ref_eval = vae_forward_ref(x, params, training=False)
    ref_train = vae_forward_ref(x, params, training=True, eps=eps)

    # bf16 weights / activations / eps vs f32 reference -> relaxed tolerance.
    for g, w in list(zip(out_eval, ref_eval)) + list(zip(out_train, ref_train)):
        check(g, w, 8e-2)

    # Batch not a multiple of tile_b -> exercises the row-pad / row-slice path.
    B2 = 24
    x2 = jax.random.uniform(xkey2, (B2, IN_DIM), jnp.float32)
    out2 = vae_forward(x2, packed, training=False)
    jax.block_until_ready(out2)
    ref2 = vae_forward_ref(x2, params, training=False)
    for g, w in zip(out2, ref2):
        check(g, w, 8e-2)

    print("KERNEL_OK")
</pallas_src>

<mosaic_0001>
module attributes {stable_mosaic.version = 11 : i64} {
  func.func @_vae_kernel(%arg0: i32, %arg1: memref<16x784xbf16, #tpu.memory_space<vmem>>, %arg2: memref<784x512xbf16, #tpu.memory_space<vmem>>, %arg3: memref<1x512xf32, #tpu.memory_space<vmem>>, %arg4: memref<512x128xbf16, #tpu.memory_space<vmem>>, %arg5: memref<1x128xf32, #tpu.memory_space<vmem>>, %arg6: memref<128x128xbf16, #tpu.memory_space<vmem>>, %arg7: memref<1x128xf32, #tpu.memory_space<vmem>>, %arg8: memref<128x128xbf16, #tpu.memory_space<vmem>>, %arg9: memref<1x128xf32, #tpu.memory_space<vmem>>, %arg10: memref<128x512xbf16, #tpu.memory_space<vmem>>, %arg11: memref<1x512xf32, #tpu.memory_space<vmem>>, %arg12: memref<512x784xbf16, #tpu.memory_space<vmem>>, %arg13: memref<1x784xf32, #tpu.memory_space<vmem>>, %arg14: memref<16x784xf32, #tpu.memory_space<vmem>>, %arg15: memref<16x128xf32, #tpu.memory_space<vmem>>) attributes {dimension_semantics = [#tpu.dimension_semantics<parallel>], iteration_bounds = array<i64: 4>, scalar_prefetch = 0 : i64, scratch_operands = 0 : i64, tpu.core_type = #tpu.core_type<tc>, window_params = [{transform_indices = @transform_0, window_bounds = array<i64: 16, 784>}, {pipeline_mode = #tpu.pipeline_mode<synchronous>, transform_indices = @transform_1, window_bounds = array<i64: 784, 512>}, {pipeline_mode = #tpu.pipeline_mode<synchronous>, transform_indices = @transform_2, window_bounds = array<i64: 1, 512>}, {pipeline_mode = #tpu.pipeline_mode<synchronous>, transform_indices = @transform_3, window_bounds = array<i64: 512, 128>}, {pipeline_mode = #tpu.pipeline_mode<synchronous>, transform_indices = @transform_4, window_bounds = array<i64: 1, 128>}, {pipeline_mode = #tpu.pipeline_mode<synchronous>, transform_indices = @transform_5, window_bounds = array<i64: 128, 128>}, {pipeline_mode = #tpu.pipeline_mode<synchronous>, transform_indices = @transform_6, window_bounds = array<i64: 1, 128>}, {pipeline_mode = #tpu.pipeline_mode<synchronous>, transform_indices = @transform_7, window_bounds = array<i64: 128, 128>}, {pipeline_mode = #tpu.pipeline_mode<synchronous>, transform_indices = @transform_8, window_bounds = array<i64: 1, 128>}, {pipeline_mode = #tpu.pipeline_mode<synchronous>, transform_indices = @transform_9, window_bounds = array<i64: 128, 512>}, {pipeline_mode = #tpu.pipeline_mode<synchronous>, transform_indices = @transform_10, window_bounds = array<i64: 1, 512>}, {pipeline_mode = #tpu.pipeline_mode<synchronous>, transform_indices = @transform_11, window_bounds = array<i64: 512, 784>}, {pipeline_mode = #tpu.pipeline_mode<synchronous>, transform_indices = @transform_12, window_bounds = array<i64: 1, 784>}, {transform_indices = @transform_13, window_bounds = array<i64: 16, 784>}, {transform_indices = @transform_14, window_bounds = array<i64: 16, 128>}]} {
    %c0 = arith.constant 0 : index
    %c0_0 = arith.constant 0 : index
    %0 = vector.load %arg1[%c0, %c0_0] : memref<16x784xbf16, #tpu.memory_space<vmem>>, vector<16x784xbf16>
    %c0_1 = arith.constant 0 : index
    %c0_2 = arith.constant 0 : index
    %1 = vector.load %arg2[%c0_1, %c0_2] : memref<784x512xbf16, #tpu.memory_space<vmem>>, vector<784x512xbf16>
    %cst = arith.constant dense<0.000000e+00> : vector<16x512xf32>
    %2 = tpu.matmul %0, %1, %cst {dimension_numbers = #tpu.dot_dimension_numbers<[1], [0], [0], [1], [0, 0, 1, 1], [], []>} : vector<16x784xbf16>, vector<784x512xbf16>, vector<16x512xf32> -> vector<16x512xf32>
    %c0_3 = arith.constant 0 : index
    %c0_4 = arith.constant 0 : index
    %3 = vector.load %arg3[%c0_3, %c0_4] : memref<1x512xf32, #tpu.memory_space<vmem>>, vector<1x512xf32>
    %4 = vector.broadcast %3 : vector<1x512xf32> to vector<16x512xf32>
    %5 = arith.addf %2, %4 : vector<16x512xf32>
    %cst_5 = arith.constant 0.000000e+00 : f32
    %6 = vector.broadcast %cst_5 : f32 to vector<16x512xf32>
    %7 = arith.maximumf %5, %6 : vector<16x512xf32>
    %8 = arith.truncf %7 : vector<16x512xf32> to vector<16x512xbf16>
    %c0_6 = arith.constant 0 : index
    %c0_7 = arith.constant 0 : index
    %9 = vector.load %arg4[%c0_6, %c0_7] : memref<512x128xbf16, #tpu.memory_space<vmem>>, vector<512x128xbf16>
    %cst_8 = arith.constant dense<0.000000e+00> : vector<16x128xf32>
    %10 = tpu.matmul %8, %9, %cst_8 {dimension_numbers = #tpu.dot_dimension_numbers<[1], [0], [0], [1], [0, 0, 1, 1], [], []>} : vector<16x512xbf16>, vector<512x128xbf16>, vector<16x128xf32> -> vector<16x128xf32>
    %c0_9 = arith.constant 0 : index
    %c0_10 = arith.constant 0 : index
    %11 = vector.load %arg5[%c0_9, %c0_10] : memref<1x128xf32, #tpu.memory_space<vmem>>, vector<1x128xf32>
    %12 = vector.broadcast %11 : vector<1x128xf32> to vector<16x128xf32>
    %13 = arith.addf %10, %12 : vector<16x128xf32>
    %cst_11 = arith.constant 0.000000e+00 : f32
    %14 = vector.broadcast %cst_11 : f32 to vector<16x128xf32>
    %15 = arith.maximumf %13, %14 : vector<16x128xf32>
    %16 = arith.truncf %15 : vector<16x128xf32> to vector<16x128xbf16>
    %c0_12 = arith.constant 0 : index
    %c0_13 = arith.constant 0 : index
    %17 = vector.load %arg6[%c0_12, %c0_13] : memref<128x128xbf16, #tpu.memory_space<vmem>>, vector<128x128xbf16>
    %cst_14 = arith.constant dense<0.000000e+00> : vector<16x128xf32>
    %18 = tpu.matmul %16, %17, %cst_14 {dimension_numbers = #tpu.dot_dimension_numbers<[1], [0], [0], [1], [0, 0, 1, 1], [], []>} : vector<16x128xbf16>, vector<128x128xbf16>, vector<16x128xf32> -> vector<16x128xf32>
    %c0_15 = arith.constant 0 : index
    %c0_16 = arith.constant 0 : index
    %19 = vector.load %arg7[%c0_15, %c0_16] : memref<1x128xf32, #tpu.memory_space<vmem>>, vector<1x128xf32>
    %20 = vector.broadcast %19 : vector<1x128xf32> to vector<16x128xf32>
    %21 = arith.addf %18, %20 : vector<16x128xf32>
    %c0_17 = arith.constant 0 : index
    %c0_18 = arith.constant 0 : index
    %22 = vector.load %arg15[%c0_17, %c0_18] : memref<16x128xf32, #tpu.memory_space<vmem>>, vector<16x128xf32>
    tpu.vector_store %arg15[%c0_17, %c0_18], %21 {strides = array<i32>} : memref<16x128xf32, #tpu.memory_space<vmem>>, vector<16x128xf32>,
    %23 = arith.truncf %21 : vector<16x128xf32> to vector<16x128xbf16>
    %c0_19 = arith.constant 0 : index
    %c0_20 = arith.constant 0 : index
    %24 = vector.load %arg8[%c0_19, %c0_20] : memref<128x128xbf16, #tpu.memory_space<vmem>>, vector<128x128xbf16>
    %cst_21 = arith.constant dense<0.000000e+00> : vector<16x128xf32>
    %25 = tpu.matmul %23, %24, %cst_21 {dimension_numbers = #tpu.dot_dimension_numbers<[1], [0], [0], [1], [0, 0, 1, 1], [], []>} : vector<16x128xbf16>, vector<128x128xbf16>, vector<16x128xf32> -> vector<16x128xf32>
    %c0_22 = arith.constant 0 : index
    %c0_23 = arith.constant 0 : index
    %26 = vector.load %arg9[%c0_22, %c0_23] : memref<1x128xf32, #tpu.memory_space<vmem>>, vector<1x128xf32>
    %27 = vector.broadcast %26 : vector<1x128xf32> to vector<16x128xf32>
    %28 = arith.addf %25, %27 : vector<16x128xf32>
    %cst_24 = arith.constant 0.000000e+00 : f32
    %29 = vector.broadcast %cst_24 : f32 to vector<16x128xf32>
    %30 = arith.maximumf %28, %29 : vector<16x128xf32>
    %31 = arith.truncf %30 : vector<16x128xf32> to vector<16x128xbf16>
    %c0_25 = arith.constant 0 : index
    %c0_26 = arith.constant 0 : index
    %32 = vector.load %arg10[%c0_25, %c0_26] : memref<128x512xbf16, #tpu.memory_space<vmem>>, vector<128x512xbf16>
    %cst_27 = arith.constant dense<0.000000e+00> : vector<16x512xf32>
    %33 = tpu.matmul %31, %32, %cst_27 {dimension_numbers = #tpu.dot_dimension_numbers<[1], [0], [0], [1], [0, 0, 1, 1], [], []>} : vector<16x128xbf16>, vector<128x512xbf16>, vector<16x512xf32> -> vector<16x512xf32>
    %c0_28 = arith.constant 0 : index
    %c0_29 = arith.constant 0 : index
    %34 = vector.load %arg11[%c0_28, %c0_29] : memref<1x512xf32, #tpu.memory_space<vmem>>, vector<1x512xf32>
    %35 = vector.broadcast %34 : vector<1x512xf32> to vector<16x512xf32>
    %36 = arith.addf %33, %35 : vector<16x512xf32>
    %cst_30 = arith.constant 0.000000e+00 : f32
    %37 = vector.broadcast %cst_30 : f32 to vector<16x512xf32>
    %38 = arith.maximumf %36, %37 : vector<16x512xf32>
    %39 = arith.truncf %38 : vector<16x512xf32> to vector<16x512xbf16>
    %c0_31 = arith.constant 0 : index
    %c0_32 = arith.constant 0 : index
    %40 = vector.load %arg12[%c0_31, %c0_32] : memref<512x784xbf16, #tpu.memory_space<vmem>>, vector<512x784xbf16>
    %cst_33 = arith.constant dense<0.000000e+00> : vector<16x784xf32>
    %41 = tpu.matmul %39, %40, %cst_33 {dimension_numbers = #tpu.dot_dimension_numbers<[1], [0], [0], [1], [0, 0, 1, 1], [], []>} : vector<16x512xbf16>, vector<512x784xbf16>, vector<16x784xf32> -> vector<16x784xf32>
    %c0_34 = arith.constant 0 : index
    %c0_35 = arith.constant 0 : index
    %42 = vector.load %arg13[%c0_34, %c0_35] : memref<1x784xf32, #tpu.memory_space<vmem>>, vector<1x784xf32>
    %43 = vector.broadcast %42 : vector<1x784xf32> to vector<16x784xf32>
    %44 = arith.addf %41, %43 : vector<16x784xf32>
    %cst_36 = arith.constant 5.000000e-01 : f32
    %45 = vector.broadcast %cst_36 : f32 to vector<16x784xf32>
    %46 = arith.mulf %45, %44 : vector<16x784xf32>
    %47 = math.tanh %46 : vector<16x784xf32>
    %cst_37 = arith.constant 5.000000e-01 : f32
    %48 = vector.broadcast %cst_37 : f32 to vector<16x784xf32>
    %49 = arith.mulf %48, %47 : vector<16x784xf32>
    %cst_38 = arith.constant 5.000000e-01 : f32
    %50 = vector.broadcast %cst_38 : f32 to vector<16x784xf32>
    %51 = arith.addf %49, %50 : vector<16x784xf32>
    %c0_39 = arith.constant 0 : index
    %c0_40 = arith.constant 0 : index
    %52 = vector.load %arg14[%c0_39, %c0_40] : memref<16x784xf32, #tpu.memory_space<vmem>>, vector<16x784xf32>
    tpu.vector_store %arg14[%c0_39, %c0_40], %51 {strides = array<i32>} : memref<16x784xf32, #tpu.memory_space<vmem>>, vector<16x784xf32>,
    return
  }
  func.func @transform_0(%arg0: i32) -> (i32, i32) {
    %c0_i32 = arith.constant 0 : i32
    %c0_i32_0 = arith.constant 0 : i32
    return %arg0, %c0_i32 : i32, i32
  }
  func.func @transform_1(%arg0: i32) -> (i32, i32) {
    %c0_i32 = arith.constant 0 : i32
    %c0_i32_0 = arith.constant 0 : i32
    %c0_i32_1 = arith.constant 0 : i32
    return %c0_i32, %c0_i32_0 : i32, i32
  }
  func.func @transform_2(%arg0: i32) -> (i32, i32) {
    %c0_i32 = arith.constant 0 : i32
    %c0_i32_0 = arith.constant 0 : i32
    %c0_i32_1 = arith.constant 0 : i32
    return %c0_i32, %c0_i32_0 : i32, i32
  }
  func.func @transform_3(%arg0: i32) -> (i32, i32) {
    %c0_i32 = arith.constant 0 : i32
    %c0_i32_0 = arith.constant 0 : i32
    %c0_i32_1 = arith.constant 0 : i32
    return %c0_i32, %c0_i32_0 : i32, i32
  }
  func.func @transform_4(%arg0: i32) -> (i32, i32) {
    %c0_i32 = arith.constant 0 : i32
    %c0_i32_0 = arith.constant 0 : i32
    %c0_i32_1 = arith.constant 0 : i32
    return %c0_i32, %c0_i32_0 : i32, i32
  }
  func.func @transform_5(%arg0: i32) -> (i32, i32) {
    %c0_i32 = arith.constant 0 : i32
    %c0_i32_0 = arith.constant 0 : i32
    %c0_i32_1 = arith.constant 0 : i32
    return %c0_i32, %c0_i32_0 : i32, i32
  }
  func.func @transform_6(%arg0: i32) -> (i32, i32) {
    %c0_i32 = arith.constant 0 : i32
    %c0_i32_0 = arith.constant 0 : i32
    %c0_i32_1 = arith.constant 0 : i32
    return %c0_i32, %c0_i32_0 : i32, i32
  }
  func.func @transform_7(%arg0: i32) -> (i32, i32) {
    %c0_i32 = arith.constant 0 : i32
    %c0_i32_0 = arith.constant 0 : i32
    %c0_i32_1 = arith.constant 0 : i32
    return %c0_i32, %c0_i32_0 : i32, i32
  }
  func.func @transform_8(%arg0: i32) -> (i32, i32) {
    %c0_i32 = arith.constant 0 : i32
    %c0_i32_0 = arith.constant 0 : i32
    %c0_i32_1 = arith.constant 0 : i32
    return %c0_i32, %c0_i32_0 : i32, i32
  }
  func.func @transform_9(%arg0: i32) -> (i32, i32) {
    %c0_i32 = arith.constant 0 : i32
    %c0_i32_0 = arith.constant 0 : i32
    %c0_i32_1 = arith.constant 0 : i32
    return %c0_i32, %c0_i32_0 : i32, i32
  }
  func.func @transform_10(%arg0: i32) -> (i32, i32) {
    %c0_i32 = arith.constant 0 : i32
    %c0_i32_0 = arith.constant 0 : i32
    %c0_i32_1 = arith.constant 0 : i32
    return %c0_i32, %c0_i32_0 : i32, i32
  }
  func.func @transform_11(%arg0: i32) -> (i32, i32) {
    %c0_i32 = arith.constant 0 : i32
    %c0_i32_0 = arith.constant 0 : i32
    %c0_i32_1 = arith.constant 0 : i32
    return %c0_i32, %c0_i32_0 : i32, i32
  }
  func.func @transform_12(%arg0: i32) -> (i32, i32) {
    %c0_i32 = arith.constant 0 : i32
    %c0_i32_0 = arith.constant 0 : i32
    %c0_i32_1 = arith.constant 0 : i32
    return %c0_i32, %c0_i32_0 : i32, i32
  }
  func.func @transform_13(%arg0: i32) -> (i32, i32) {
    %c0_i32 = arith.constant 0 : i32
    %c0_i32_0 = arith.constant 0 : i32
    return %arg0, %c0_i32 : i32, i32
  }
  func.func @transform_14(%arg0: i32) -> (i32, i32) {
    %c0_i32 = arith.constant 0 : i32
    %c0_i32_0 = arith.constant 0 : i32
    return %arg0, %c0_i32 : i32, i32
  }
}

</mosaic_0001>

<bundles_post_ra>
// kernel: tpu_custom_call.1
= control target key start
LH: loop header
LB: loop body
LE: loop exit
PB: predicated region body
PF: predicated region fallthrough
CT: control target
= control target key end

     0   :  { %s8448_s0 = inlined_call_operand.vmem [shape: bf16[64,784], index: 0, kind: input, shape index: {}]   ;;  %s8449_s1 = inlined_call_operand.vmem [shape: bf16[784,512], index: 1, kind: input, shape index: {}]   ;;  %s8450_s2 = inlined_call_operand.vmem [shape: f32[1,512], index: 2, kind: input, shape index: {}]   ;;  %s8451_s3 = inlined_call_operand.vmem [shape: bf16[512,128], index: 3, kind: input, shape index: {}]   ;;  %s8452_s4 = inlined_call_operand.vmem [shape: f32[1,128], index: 4, kind: input, shape index: {}]   ;;  %s8453_s5 = inlined_call_operand.vmem [shape: bf16[128,128], index: 5, kind: input, shape index: {}]   ;;  %s8454_s6 = inlined_call_operand.vmem [shape: f32[1,128], index: 6, kind: input, shape index: {}]   ;;  %s8455_s7 = inlined_call_operand.vmem [shape: bf16[128,128], index: 7, kind: input, shape index: {}]   ;;  %s8456_s8 = inlined_call_operand.vmem [shape: f32[1,128], index: 8, kind: input, shape index: {}]   ;;  %s8457_s9 = inlined_call_operand.vmem [shape: bf16[128,512], index: 9, kind: input, shape index: {}]   ;;  %s8458_s10 = inlined_call_operand.vmem [shape: f32[1,512], index: 10, kind: input, shape index: {}]   ;;  %s8459_s11 = inlined_call_operand.vmem [shape: bf16[512,784], index: 11, kind: input, shape index: {}]   ;;  %s8460_s12 = inlined_call_operand.vmem [shape: f32[1,784], index: 12, kind: input, shape index: {}]   ;;  %s8461_s13 = inlined_call_operand.hbm [shape: f32[64,784], index: 13, kind: output, shape index: {0}]   ;;  %s8462_s14 = inlined_call_operand.hbm [shape: f32[64,128], index: 14, kind: output, shape index: {1}]  }
   0x1   :  { %8468 = sst [smem:[#allocation13_spill]] %s8448_s0 }
   0x2   :  { %20 = vsyncpa [#allocation3], 0 }
   0x3   :  { %22 = vsyncpa [#allocation3 + $0x1], 0 }
   0x4   :  { %23 = vsyncpa [#allocation5], 0 }
   0x5   :  { %25 = vsyncpa [#allocation5 + $0x1], 0  ;;  %s6673_s29 = smov 0   ;;  %s6675_s30 = smov 0  }
   0x6   :  { %s6677_s15 = smov 0   ;;  %s6679_s16 = smov 0  }
   0x7 LB: > { %8469 = sst [smem:[#allocation8_spill]] %s6575_s29  ;;  %s6694_s17 = sadd.s32 4294967295, %s6587_s16   ;;  %s6587_s16 = sphi %s6679_s16, %s8480_s16   ;;  %s6583_s15 = sphi %s6677_s15, %s8482_s15   ;;  %s6579_s30 = sphi %s6675_s30, %s8484_s30   ;;  %s6575_s29 = sphi %s6673_s29, %s8483_s29  }
   0x8   : > { %8470 = sst [smem:[#allocation9_spill]] %s6583_s15  ;;  %s4961_s18 = sadd.s32 4294967294, %s6587_s16  }
   0x9   : > { %s6698_s19 = sadd.s32 1, %s6587_s16   ;;  %s316_s20 = sadd.s32 1, %s6583_s15 }
   0xa   : > { %8471 = sst [smem:[#allocation10_spill]] %s6698_s19  ;;  %s313_s21 = ssub.s32 %s6587_s16, %s6698_s19 }
   0xb   : > { %p326_p0 = scmp.ne.s32.totalorder %s6583_s15, %s6579_s30  ;;  %p314_p1 = scmp.eq.s32.totalorder %s313_s21, 0 }
   0xc   : > { %p327_p2 = scmp.eq.s32.totalorder %s6694_s17, 3  ;;  %p332_p3 = scmp.ne.s32.totalorder %s6579_s30, %s6575_s29 }
   0xd   : > { %p333_p4 = scmp.eq.s32.totalorder %s4961_s18, 3  ;;  %p4964_p7 = scmp.ge.s32.totalorder %s6587_s16, 1 }
   0xe   : > { %s6709_s22 = scalar_select %p314_p1, %s6583_s15, %s316_s20  }
   0xf   : > { %p6711_p5 = por %p327_p2, %p326_p0  ;;  %p6715_p6 = por %p333_p4, %p332_p3 }
  0x10   : > { %8472 = sst [smem:[#allocation11_spill]] %s6709_s22  ;;  %p423_p8 = scmp.lt.s32.totalorder %s6587_s16, 5 }
  0x11   : > { %s8474_s24 = scalar_select %p6715_p6, 1, 0 }
  0x12   : > { %p424_p9 = pnand %p4964_p7, %p423_p8 }
  0x13   : > { %8475 = sst [smem:[#allocation12_spill]] %s8474_s24  ;;  %v5745_v0 = vld [vmem:[%s8449_s1 + $0x4] ss:$16 sps:$4 sm:$0xff] (!%p424_p9)   ;;  %v5747_v1 = vld [vmem:[%s8449_s1 + $0xc] ss:$16 sps:$4 sm:$0xff] (!%p424_p9)   ;;  %s4966_s25 = sshll.u32 (!%p424_p9), %s6694_s17, 1 }
  0x14   : > { %427 = sbr.rel (%p424_p9) target bundleno = 1802 (0x70a), region = 72  ;;  %1730 = vmatprep.subr.bf16.mxu0 (!%p424_p9), %v5745_v0  ;;  %v5749_v2 = vld [vmem:[%s8449_s1] ss:$16 sps:$4 sm:$0xff] (!%p424_p9)   ;;  %v5750_v3 = vld [vmem:[%s8449_s1 + $0x8] ss:$16 sps:$4 sm:$0xff] (!%p424_p9)   ;;  %1902 = vmatprep.subr.bf16.mxu1 (!%p424_p9), %v5747_v1  ;;  %p476_p10 = scmp.lt.s32.totalorder (!%p424_p9), %s4966_s25, 7 }
  0x15   : > { %v5751_v4 = vld [vmem:[%s8449_s1 + $0x24] ss:$16 sps:$4 sm:$0xff] (!%p424_p9)   ;;  %1731 = vmatpush1.bf16.msra.mxu0 (!%p424_p9), %v5749_v2  ;;  %1903 = vmatpush1.bf16.msra.mxu1 (!%p424_p9), %v5750_v3  ;;  %v5753_v5 = vld [vmem:[%s8449_s1 + $0x2c] ss:$16 sps:$4 sm:$0xff] (!%p424_p9)   ;;  %v5755_v6 = vld [vmem:[%s8449_s1 + $0x20] ss:$16 sps:$4 sm:$0xff] (!%p424_p9)  }
  0x16   : > { %1732 = vmatprep.subr.bf16.mxu0 (!%p424_p9), %v5751_v4  ;;  %v5756_v7 = vld [vmem:[%s8449_s1 + $0x28] ss:$16 sps:$4 sm:$0xff] (!%p424_p9)   ;;  %1904 = vmatprep.subr.bf16.mxu1 (!%p424_p9), %v5753_v5  ;;  %v5757_v8 = vld [vmem:[%s8449_s1 + $0x44] ss:$16 sps:$4 sm:$0xff] (!%p424_p9)   ;;  %v5759_v9 = vld [vmem:[%s8449_s1 + $0x4c] ss:$16 sps:$4 sm:$0xff] (!%p424_p9)  }
  0x17   : > { %v5761_v10 = vld [vmem:[%s8449_s1 + $0x40] ss:$16 sps:$4 sm:$0xff] (!%p424_p9)   ;;  %v5762_v11 = vld [vmem:[%s8449_s1 + $0x48] ss:$16 sps:$4 sm:$0xff] (!%p424_p9)   ;;  %v5763_v12 = vld [vmem:[%s8449_s1 + $0x64] ss:$16 sps:$4 sm:$0xff] (!%p424_p9)  }
  0x18   : > { %v5765_v13 = vld [vmem:[%s8449_s1 + $0x6c] ss:$16 sps:$4 sm:$0xff] (!%p424_p9)   ;;  %v5767_v14 = vld [vmem:[%s8449_s1 + $0x60] ss:$16 sps:$4 sm:$0xff] (!%p424_p9)   ;;  %v5768_v15 = vld [vmem:[%s8449_s1 + $0x68] ss:$16 sps:$4 sm:$0xff] (!%p424_p9)  }
  0x19   : > { %1733 = vmatpush1.bf16.msra.mxu0 (!%p424_p9), %v5755_v6  ;;  %1905 = vmatpush1.bf16.msra.mxu1 (!%p424_p9), %v5756_v7  ;;  %v5769_v16 = vld [vmem:[%s8449_s1 + $0x84] ss:$16 sps:$4 sm:$0xff] (!%p424_p9)   ;;  %v5771_v17 = vld [vmem:[%s8449_s1 + $0x8c] ss:$16 sps:$4 sm:$0xff] (!%p424_p9)   ;;  %v5773_v18 = vld [vmem:[%s8449_s1 + $0x80] ss:$16 sps:$4 sm:$0xff] (!%p424_p9)  }
  0x1a   : > { %1734 = vmatprep.subr.bf16.mxu0 (!%p424_p9), %v5757_v8  ;;  %1906 = vmatprep.subr.bf16.mxu1 (!%p424_p9), %v5759_v9  ;;  %v5774_v19 = vld [vmem:[%s8449_s1 + $0x88] ss:$16 sps:$4 sm:$0xff] (!%p424_p9)   ;;  %v5775_v20 = vld [vmem:[%s8449_s1 + $0xa4] ss:$16 sps:$4 sm:$0xff] (!%p424_p9)   ;;  %v5777_v21 = vld [vmem:[%s8449_s1 + $0xac] ss:$16 sps:$4 sm:$0xff] (!%p424_p9)  }
  0x1b   : > { %v5779_v22 = vld [vmem:[%s8449_s1 + $0xa0] ss:$16 sps:$4 sm:$0xff]   ;;  %v5780_v23 = vld [vmem:[%s8449_s1 + $0xa8] ss:$16 sps:$4 sm:$0xff]   ;;  %v5781_v24 = vld [vmem:[%s8449_s1 + $0xc4] ss:$16 sps:$4 sm:$0xff]  }
  0x1c   : > { %v5783_v25 = vld [vmem:[%s8449_s1 + $0xcc] ss:$16 sps:$4 sm:$0xff]   ;;  %v5785_v26 = vld [vmem:[%s8449_s1 + $0xc0] ss:$16 sps:$4 sm:$0xff]   ;;  %v5786_v27 = vld [vmem:[%s8449_s1 + $0xc8] ss:$16 sps:$4 sm:$0xff]  }
  0x1d   : > { %1735 = vmatpush1.bf16.msra.mxu0 %v5761_v10  ;;  %1907 = vmatpush1.bf16.msra.mxu1 %v5762_v11  ;;  %v5787_v28 = vld [vmem:[%s8449_s1 + $0xe4] ss:$16 sps:$4 sm:$0xff]   ;;  %v5789_v29 = vld [vmem:[%s8449_s1 + $0xec] ss:$16 sps:$4 sm:$0xff]   ;;  %v5791_v30 = vld [vmem:[%s8449_s1 + $0xe0] ss:$16 sps:$4 sm:$0xff]  }
  0x1e   : > { %1736 = vmatprep.subr.bf16.mxu0 %v5763_v12  ;;  %1908 = vmatprep.subr.bf16.mxu1 %v5765_v13  ;;  %v5792_v31 = vld [vmem:[%s8449_s1 + $0xe8] ss:$16 sps:$4 sm:$0xff]   ;;  %v5793_v32 = vld [vmem:[%s8449_s1 + $0x104] ss:$16 sps:$4 sm:$0xff]   ;;  %v5795_v33 = vld [vmem:[%s8449_s1 + $0x10c] ss:$16 sps:$4 sm:$0xff]  }
  0x1f   : > { %v5797_v34 = vld [vmem:[%s8449_s1 + $0x100] ss:$16 sps:$4 sm:$0xff]   ;;  %v5798_v35 = vld [vmem:[%s8449_s1 + $0x108] ss:$16 sps:$4 sm:$0xff]   ;;  %v5799_v36 = vld [vmem:[%s8449_s1 + $0x124] ss:$16 sps:$4 sm:$0xff]  }
  0x20   : > { %s8486_s25 = smov (!%p476_p10, %s4966_s25), 7  ;;  %v5801_v37 = vld [vmem:[%s8449_s1 + $0x12c] ss:$16 sps:$4 sm:$0xff]   ;;  %v5803_v38 = vld [vmem:[%s8449_s1 + $0x120] ss:$16 sps:$4 sm:$0xff]   ;;  %s8476_s0 = sld [smem:[#allocation13_spill]] }
  0x21   : > { %1737 = vmatpush1.bf16.msra.mxu0 %v5767_v14  ;;  %1909 = vmatpush1.bf16.msra.mxu1 %v5768_v15  ;;  %v5804_v39 = vld [vmem:[%s8449_s1 + $0x128] ss:$16 sps:$4 sm:$0xff]   ;;  %v5805_v40 = vld [vmem:[%s8449_s1 + $0x144] ss:$16 sps:$4 sm:$0xff]   ;;  %s5692_s28 = smul.u32 28, %s8486_s25  ;;  %vm1726_vm0 = vcmask 130048  }
  0x22   : > { %1738 = vmatprep.subr.bf16.mxu0 %v5769_v16  ;;  %1910 = vmatprep.subr.bf16.mxu1 %v5771_v17  ;;  %v5807_v41 = vld [vmem:[%s8449_s1 + $0x14c] ss:$16 sps:$4 sm:$0xff]   ;;  %v5809_v42 = vld [vmem:[%s8449_s1 + $0x140] ss:$16 sps:$4 sm:$0xff]   ;;  %v5810_v43 = vld [vmem:[%s8449_s1 + $0x148] ss:$16 sps:$4 sm:$0xff]  }
  0x23   : > { %v5811_v44 = vld [vmem:[%s8449_s1 + $0x164] ss:$16 sps:$4 sm:$0xff]   ;;  %v5813_v45 = vld [vmem:[%s8449_s1 + $0x16c] ss:$16 sps:$4 sm:$0xff]   ;;  %v5815_v46 = vld [vmem:[%s8449_s1 + $0x160] ss:$16 sps:$4 sm:$0xff]  }
  0x24   : > { %v5816_v47 = vld [vmem:[%s8449_s1 + $0x168] ss:$16 sps:$4 sm:$0xff]   ;;  %v5817_v49 = vld [vmem:[%s8449_s1 + $0x184] ss:$16 sps:$4 sm:$0xff]   ;;  %v5819_v50 = vld [vmem:[%s8449_s1 + $0x18c] ss:$16 sps:$4 sm:$0xff]  }
  0x25   : > { %1739 = vmatpush1.bf16.msra.mxu0 %v5773_v18  ;;  %1911 = vmatpush1.bf16.msra.mxu1 %v5774_v19  ;;  %v5821_v51 = vld [vmem:[%s8449_s1 + $0x180] ss:$16 sps:$4 sm:$0xff]   ;;  %v5822_v52 = vld [vmem:[%s8449_s1 + $0x188] ss:$16 sps:$4 sm:$0xff]   ;;  %v5823_v53 = vld [vmem:[%s8449_s1 + $0x1a4] ss:$16 sps:$4 sm:$0xff]  }
  0x26   : > { %1740 = vmatprep.subr.bf16.mxu0 %v5775_v20  ;;  %1912 = vmatprep.subr.bf16.mxu1 %v5777_v21  ;;  %s6860_s27 = scalar_lea.vmem %s8476_s0, %s5692_s28  ;;  %v5825_v54 = vld [vmem:[%s8449_s1 + $0x1ac] ss:$16 sps:$4 sm:$0xff]   ;;  %v5827_v55 = vld [vmem:[%s8449_s1 + $0x1a0] ss:$16 sps:$4 sm:$0xff]   ;;  %v5828_v56 = vld [vmem:[%s8449_s1 + $0x1a8] ss:$16 sps:$4 sm:$0xff]  }
  0x27   : > { %v5843_v48 = vld [vmem:[%s6860_s27 + $0x4] ss:$28 sps:$4 sm:$0xff]   ;;  %v5831_v58 = vld [vmem:[%s8449_s1 + $0x1cc] ss:$16 sps:$4 sm:$0xff]   ;;  %v5834_v60 = vld [vmem:[%s8449_s1 + $0x1c8] ss:$16 sps:$4 sm:$0xff]  }
  0x28   : > { %1762 = vmatprep.mubr.bf16.mxu0 %v5843_v48  ;;  %1934 = vmatprep.mubr.bf16.mxu1 %v5843_v48  ;;  %v5829_v57 = vld [vmem:[%s8449_s1 + $0x1c4] ss:$16 sps:$4 sm:$0xff]   ;;  %v5833_v59 = vld [vmem:[%s8449_s1 + $0x1c0] ss:$16 sps:$4 sm:$0xff]   ;;  %v5837_v62 = vld [vmem:[%s8449_s1 + $0x1ec] ss:$16 sps:$4 sm:$0xff]  }
  0x29   : > { %1741 = vmatpush1.bf16.msra.mxu0 %v5779_v22  ;;  %1913 = vmatpush1.bf16.msra.mxu1 %v5780_v23  ;;  %v5835_v61 = vld [vmem:[%s8449_s1 + $0x1e4] ss:$16 sps:$4 sm:$0xff]   ;;  %v5839_v63 = vld [vmem:[%s8449_s1 + $0x1e0] ss:$16 sps:$4 sm:$0xff]   ;;  %v5840_v0 = vld [vmem:[%s8449_s1 + $0x1e8] ss:$16 sps:$4 sm:$0xff]  }
  0x2a   : > { %1742 = vmatprep.subr.bf16.mxu0 %v5781_v24  ;;  %1914 = vmatprep.subr.bf16.mxu1 %v5783_v25  ;;  %v5846_v1 = vld [vmem:[%s8449_s1 + $0x204] ss:$16 sps:$4 sm:$0xff]   ;;  %v5849_v2 = vld [vmem:[%s8449_s1 + $0x20c] ss:$16 sps:$4 sm:$0xff]   ;;  %v5844_v4 = vld [vmem:[%s8449_s1 + $0x200] ss:$16 sps:$4 sm:$0xff]  }
  0x2b   : > { %v5841_v3 = vld [vmem:[%s6860_s27] ss:$28 sps:$4 sm:$0xff]   ;;  %v5847_v5 = vld [vmem:[%s8449_s1 + $0x208] ss:$16 sps:$4 sm:$0xff]   ;;  %v5852_v6 = vld [vmem:[%s8449_s1 + $0x224] ss:$16 sps:$4 sm:$0xff]  }
  0x2c   : > { %v5855_v7 = vld [vmem:[%s8449_s1 + $0x22c] ss:$16 sps:$4 sm:$0xff]   ;;  %v5850_v8 = vld [vmem:[%s8449_s1 + $0x220] ss:$16 sps:$4 sm:$0xff]   ;;  %v5853_v9 = vld [vmem:[%s8449_s1 + $0x228] ss:$16 sps:$4 sm:$0xff]  }
  0x2d   : > { %1743 = vmatpush1.bf16.msra.mxu0 %v5785_v26  ;;  %1915 = vmatpush1.bf16.msra.mxu1 %v5786_v27  ;;  %v5858_v10 = vld [vmem:[%s8449_s1 + $0x244] ss:$16 sps:$4 sm:$0xff]   ;;  %v5861_v11 = vld [vmem:[%s8449_s1 + $0x24c] ss:$16 sps:$4 sm:$0xff]   ;;  %v5856_v12 = vld [vmem:[%s8449_s1 + $0x240] ss:$16 sps:$4 sm:$0xff]  }
  0x2e   : > { %1744 = vmatprep.subr.bf16.mxu0 %v5787_v28  ;;  %1916 = vmatprep.subr.bf16.mxu1 %v5789_v29  ;;  %v5859_v13 = vld [vmem:[%s8449_s1 + $0x248] ss:$16 sps:$4 sm:$0xff]   ;;  %v5864_v14 = vld [vmem:[%s8449_s1 + $0x264] ss:$16 sps:$4 sm:$0xff]   ;;  %v5867_v15 = vld [vmem:[%s8449_s1 + $0x26c] ss:$16 sps:$4 sm:$0xff]  }
  0x2f   : > { %v5862_v16 = vld [vmem:[%s8449_s1 + $0x260] ss:$16 sps:$4 sm:$0xff]   ;;  %v5865_v17 = vld [vmem:[%s8449_s1 + $0x268] ss:$16 sps:$4 sm:$0xff]   ;;  %v5870_v18 = vld [vmem:[%s8449_s1 + $0x284] ss:$16 sps:$4 sm:$0xff]  }
  0x30   : > { %v5873_v19 = vld [vmem:[%s8449_s1 + $0x28c] ss:$16 sps:$4 sm:$0xff]   ;;  %v5868_v20 = vld [vmem:[%s8449_s1 + $0x280] ss:$16 sps:$4 sm:$0xff]   ;;  %v5871_v21 = vld [vmem:[%s8449_s1 + $0x288] ss:$16 sps:$4 sm:$0xff]  }
  0x31   : > { %1745 = vmatpush1.bf16.msra.mxu0 %v5791_v30  ;;  %1917 = vmatpush1.bf16.msra.mxu1 %v5792_v31  ;;  %v5876_v22 = vld [vmem:[%s8449_s1 + $0x2a4] ss:$16 sps:$4 sm:$0xff]   ;;  %v5879_v23 = vld [vmem:[%s8449_s1 + $0x2ac] ss:$16 sps:$4 sm:$0xff]   ;;  %v5874_v24 = vld [vmem:[%s8449_s1 + $0x2a0] ss:$16 sps:$4 sm:$0xff]  }
  0x32   : > { %1746 = vmatprep.subr.bf16.mxu0 %v5793_v32  ;;  %1918 = vmatprep.subr.bf16.mxu1 %v5795_v33  ;;  %v5877_v25 = vld [vmem:[%s8449_s1 + $0x2a8] ss:$16 sps:$4 sm:$0xff]   ;;  %v5882_v26 = vld [vmem:[%s8449_s1 + $0x2c4] ss:$16 sps:$4 sm:$0xff]   ;;  %v5885_v27 = vld [vmem:[%s8449_s1 + $0x2cc] ss:$16 sps:$4 sm:$0xff]  }
  0x33   : > { %v5880_v28 = vld [vmem:[%s8449_s1 + $0x2c0] ss:$16 sps:$4 sm:$0xff]   ;;  %v5883_v29 = vld [vmem:[%s8449_s1 + $0x2c8] ss:$16 sps:$4 sm:$0xff]   ;;  %v5888_v31 = vld [vmem:[%s8449_s1 + $0x2e4] ss:$16 sps:$4 sm:$0xff]  }
  0x34   : > { %v5942_v30 = vld [vmem:[%s6860_s27 + $0xc] ss:$28 sps:$4 sm:$0xff]   ;;  %v5886_v33 = vld [vmem:[%s8449_s1 + $0x2e0] ss:$16 sps:$4 sm:$0xff]   ;;  %vm6591_vm1 = vmmov 0   ;;  %s7553_s18 = sand.u32 1, %s6579_s30  }
  0x35   : > { %1747 = vmatpush1.bf16.msra.mxu0 %v5797_v34  ;;  %1919 = vmatpush1.bf16.msra.mxu1 %v5798_v35  ;;  %v5891_v32 = vld [vmem:[%s8449_s1 + $0x2ec] ss:$16 sps:$4 sm:$0xff]   ;;  %v5889_v34 = vld [vmem:[%s8449_s1 + $0x2e8] ss:$16 sps:$4 sm:$0xff]   ;;  %v5894_v35 = vld [vmem:[%s8449_s1 + $0x304] ss:$16 sps:$4 sm:$0xff]  }
  0x36   : > { %1748 = vmatprep.subr.bf16.mxu0 %v5799_v36  ;;  %1920 = vmatprep.subr.bf16.mxu1 %v5801_v37  ;;  %v5897_v36 = vld [vmem:[%s8449_s1 + $0x30c] ss:$16 sps:$4 sm:$0xff]   ;;  %v5892_v37 = vld [vmem:[%s8449_s1 + $0x300] ss:$16 sps:$4 sm:$0xff]   ;;  %s4965_s20 = sshll.u32 %s7553_s18, 4  ;;  %s5691_s28 = smul.u32 112, %s7553_s18 }
  0x37   : > { %v5915_v48 = vld [vmem:[%s8449_s1 + $0x36c] ss:$16 sps:$4 sm:$0xff]   ;;  %s6592_s21 = smov [#allocation4]  }
  0x38   : > { %s8341_s24 = scalar_lea.vmem [#allocation2], %s5691_s28  ;;  %s6497_s15 = sshll.u32 %s6592_s21, 4  ;;  %s6498_s15 = int_to_ptr.vmem [resolvable:$false] %s6497_s15 }
  0x39   : > { %1749 = vmatpush1.bf16.msra.mxu0 %v5803_v38  ;;  %1921 = vmatpush1.bf16.msra.mxu1 %v5804_v39  ;;  %v5895_v38 = vld [vmem:[%s8449_s1 + $0x308] ss:$16 sps:$4 sm:$0xff]   ;;  %v5900_v39 = vld [vmem:[%s8449_s1 + $0x324] ss:$16 sps:$4 sm:$0xff]   ;;  %s6499_s28 = scalar_lea.vmem %s6498_s15, 512 }
  0x3a   : > { %1750 = vmatprep.subr.bf16.mxu0 %v5805_v40  ;;  %1922 = vmatprep.subr.bf16.mxu1 %v5807_v41  ;;  %v5903_v40 = vld [vmem:[%s8449_s1 + $0x32c] ss:$16 sps:$4 sm:$0xff]   ;;  %v5898_v41 = vld [vmem:[%s8449_s1 + $0x320] ss:$16 sps:$4 sm:$0xff]  }
  0x3d   : > { %1751 = vmatpush1.bf16.msra.mxu0 %v5809_v42  ;;  %1923 = vmatpush1.bf16.msra.mxu1 %v5810_v43  ;;  %v5901_v42 = vld [vmem:[%s8449_s1 + $0x328] ss:$16 sps:$4 sm:$0xff]   ;;  %v5906_v43 = vld [vmem:[%s8449_s1 + $0x344] ss:$16 sps:$4 sm:$0xff]  }
  0x3e   : > { %1752 = vmatprep.subr.bf16.mxu0 %v5811_v44  ;;  %1924 = vmatprep.subr.bf16.mxu1 %v5813_v45  ;;  %v5909_v44 = vld [vmem:[%s8449_s1 + $0x34c] ss:$16 sps:$4 sm:$0xff]   ;;  %v5904_v45 = vld [vmem:[%s8449_s1 + $0x340] ss:$16 sps:$4 sm:$0xff]  }
  0x41   : > { %1753 = vmatpush1.bf16.msra.mxu0 %v5815_v46  ;;  %1925 = vmatpush1.bf16.msra.mxu1 %v5816_v47  ;;  %v5907_v46 = vld [vmem:[%s8449_s1 + $0x348] ss:$16 sps:$4 sm:$0xff]   ;;  %v5912_v47 = vld [vmem:[%s8449_s1 + $0x364] ss:$16 sps:$4 sm:$0xff]  }
  0x42   : > { %1754 = vmatprep.subr.bf16.mxu0 %v5817_v49  ;;  %1926 = vmatprep.subr.bf16.mxu1 %v5819_v50  ;;  %v5910_v49 = vld [vmem:[%s8449_s1 + $0x360] ss:$16 sps:$4 sm:$0xff]   ;;  %v5913_v50 = vld [vmem:[%s8449_s1 + $0x368] ss:$16 sps:$4 sm:$0xff]  }
  0x45   : > { %1755 = vmatpush1.bf16.msra.mxu0 %v5821_v51  ;;  %1927 = vmatpush1.bf16.msra.mxu1 %v5822_v52  ;;  %v5918_v51 = vld [vmem:[%s8449_s1 + $0x384] ss:$16 sps:$4 sm:$0xff]   ;;  %v5921_v52 = vld [vmem:[%s8449_s1 + $0x38c] ss:$16 sps:$4 sm:$0xff]  }
  0x46   : > { %1756 = vmatprep.subr.bf16.mxu0 %v5823_v53  ;;  %1928 = vmatprep.subr.bf16.mxu1 %v5825_v54  ;;  %v5916_v53 = vld [vmem:[%s8449_s1 + $0x380] ss:$16 sps:$4 sm:$0xff]   ;;  %v5919_v54 = vld [vmem:[%s8449_s1 + $0x388] ss:$16 sps:$4 sm:$0xff]  }
  0x49   : > { %1757 = vmatpush1.bf16.msra.mxu0 %v5827_v55  ;;  %1929 = vmatpush1.bf16.msra.mxu1 %v5828_v56  ;;  %v5924_v55 = vld [vmem:[%s8449_s1 + $0x3a4] ss:$16 sps:$4 sm:$0xff]   ;;  %v5927_v56 = vld [vmem:[%s8449_s1 + $0x3ac] ss:$16 sps:$4 sm:$0xff]  }
  0x4a   : > { %1758 = vmatprep.subr.bf16.mxu0 %v5829_v57  ;;  %1930 = vmatprep.subr.bf16.mxu1 %v5831_v58  ;;  %v5922_v57 = vld [vmem:[%s8449_s1 + $0x3a0] ss:$16 sps:$4 sm:$0xff]   ;;  %v5925_v58 = vld [vmem:[%s8449_s1 + $0x3a8] ss:$16 sps:$4 sm:$0xff]  }
  0x4d   : > { %1759 = vmatpush1.bf16.msra.mxu0 %v5833_v59  ;;  %1931 = vmatpush1.bf16.msra.mxu1 %v5834_v60  ;;  %v5930_v59 = vld [vmem:[%s8449_s1 + $0x3c4] ss:$16 sps:$4 sm:$0xff]   ;;  %v5933_v60 = vld [vmem:[%s8449_s1 + $0x3cc] ss:$16 sps:$4 sm:$0xff]  }
  0x4e   : > { %1760 = vmatprep.subr.bf16.mxu0 %v5835_v61  ;;  %1932 = vmatprep.subr.bf16.mxu1 %v5837_v62  ;;  %v5928_v61 = vld [vmem:[%s8449_s1 + $0x3c0] ss:$16 sps:$4 sm:$0xff]   ;;  %v5931_v62 = vld [vmem:[%s8449_s1 + $0x3c8] ss:$16 sps:$4 sm:$0xff]  }
  0x51   : > { %1761 = vmatpush1.bf16.msra.mxu0 %v5839_v63  ;;  %1933 = vmatpush1.bf16.msra.mxu1 %v5840_v0  ;;  %v5936_v63 = vld [vmem:[%s8449_s1 + $0x3e4] ss:$16 sps:$4 sm:$0xff]   ;;  %v5939_v0 = vld [vmem:[%s8449_s1 + $0x3ec] ss:$16 sps:$4 sm:$0xff]  }
  0x52   : > { %1773 = vmatprep.subr.bf16.mxu0 %v5846_v1  ;;  %1945 = vmatprep.subr.bf16.mxu1 %v5849_v2  ;;  %v5934_v1 = vld [vmem:[%s8449_s1 + $0x3e0] ss:$16 sps:$4 sm:$0xff]   ;;  %v5937_v2 = vld [vmem:[%s8449_s1 + $0x3e8] ss:$16 sps:$4 sm:$0xff]  }
  0x54   : > { %1763 = vmatmul.mubr.bf16.vlgmr.msra.gmra.mrb[0].mxu0 %v5841_v3  ;;  %1935 = vmatmul.mubr.bf16.vlgmr.msra.gmra.mrb[0].mxu1 %v5841_v3  ;;  %v5945_v3 = vld [vmem:[%s8449_s1 + $0x404] ss:$16 sps:$4 sm:$0xff]  }
  0x55   : > { %1774 = vmatpush1.bf16.msra.mxu0 %v5844_v4  ;;  %1946 = vmatpush1.bf16.msra.mxu1 %v5847_v5  ;;  %v5948_v4 = vld [vmem:[%s8449_s1 + $0x40c] ss:$16 sps:$4 sm:$0xff]   ;;  %v5940_v5 = vld [vmem:[%s6860_s27 + $0x8] ss:$28 sps:$4 sm:$0xff]  }
  0x56   : > { %1775 = vmatprep.subr.bf16.mxu0 %v5852_v6  ;;  %1947 = vmatprep.subr.bf16.mxu1 %v5855_v7  ;;  %v5943_v6 = vld [vmem:[%s8449_s1 + $0x400] ss:$16 sps:$4 sm:$0xff]   ;;  %v5946_v7 = vld [vmem:[%s8449_s1 + $0x408] ss:$16 sps:$4 sm:$0xff]  }
  0x57   : > { %1805 = vmatprep.mubr.bf16.mxu0 %v5942_v30  ;;  %1977 = vmatprep.mubr.bf16.mxu1 %v5942_v30  ;;  %v5984_v30 = vld [vmem:[%s8449_s1 + $0x4cc] ss:$16 sps:$4 sm:$0xff]  }
  0x59   : > { %1776 = vmatpush1.bf16.msra.mxu0 %v5850_v8  ;;  %1948 = vmatpush1.bf16.msra.mxu1 %v5853_v9  ;;  %v5951_v8 = vld [vmem:[%s8449_s1 + $0x424] ss:$16 sps:$4 sm:$0xff]   ;;  %v5954_v9 = vld [vmem:[%s8449_s1 + $0x42c] ss:$16 sps:$4 sm:$0xff]  }
  0x5a   : > { %1777 = vmatprep.subr.bf16.mxu0 %v5858_v10  ;;  %1949 = vmatprep.subr.bf16.mxu1 %v5861_v11  ;;  %v5949_v10 = vld [vmem:[%s8449_s1 + $0x420] ss:$16 sps:$4 sm:$0xff]   ;;  %v5952_v11 = vld [vmem:[%s8449_s1 + $0x428] ss:$16 sps:$4 sm:$0xff]  }
  0x5d   : > { %1778 = vmatpush1.bf16.msra.mxu0 %v5856_v12  ;;  %1950 = vmatpush1.bf16.msra.mxu1 %v5859_v13  ;;  %v6041_v12 = vld [vmem:[%s6860_s27 + $0x14] ss:$28 sps:$4 sm:$0xff]  }
  0x5e   : > { %1779 = vmatprep.subr.bf16.mxu0 %v5864_v14  ;;  %1951 = vmatprep.subr.bf16.mxu1 %v5867_v15  ;;  %v5957_v13 = vld [vmem:[%s8449_s1 + $0x444] ss:$16 sps:$4 sm:$0xff]   ;;  %v5960_v14 = vld [vmem:[%s8449_s1 + $0x44c] ss:$16 sps:$4 sm:$0xff]   ;;  %v5955_v15 = vld [vmem:[%s8449_s1 + $0x440] ss:$16 sps:$4 sm:$0xff]  }
  0x61   : > { %1780 = vmatpush1.bf16.msra.mxu0 %v5862_v16  ;;  %1952 = vmatpush1.bf16.msra.mxu1 %v5865_v17  ;;  %v5958_v16 = vld [vmem:[%s8449_s1 + $0x448] ss:$16 sps:$4 sm:$0xff]   ;;  %v5963_v17 = vld [vmem:[%s8449_s1 + $0x464] ss:$16 sps:$4 sm:$0xff]  }
  0x62   : > { %1781 = vmatprep.subr.bf16.mxu0 %v5870_v18  ;;  %1953 = vmatprep.subr.bf16.mxu1 %v5873_v19  ;;  %v5966_v18 = vld [vmem:[%s8449_s1 + $0x46c] ss:$16 sps:$4 sm:$0xff]   ;;  %v5961_v19 = vld [vmem:[%s8449_s1 + $0x460] ss:$16 sps:$4 sm:$0xff]  }
  0x65   : > { %1782 = vmatpush1.bf16.msra.mxu0 %v5868_v20  ;;  %1954 = vmatpush1.bf16.msra.mxu1 %v5871_v21  ;;  %v5964_v20 = vld [vmem:[%s8449_s1 + $0x468] ss:$16 sps:$4 sm:$0xff]   ;;  %v5969_v21 = vld [vmem:[%s8449_s1 + $0x484] ss:$16 sps:$4 sm:$0xff]  }
  0x66   : > { %1783 = vmatprep.subr.bf16.mxu0 %v5876_v22  ;;  %1955 = vmatprep.subr.bf16.mxu1 %v5879_v23  ;;  %v5972_v22 = vld [vmem:[%s8449_s1 + $0x48c] ss:$16 sps:$4 sm:$0xff]   ;;  %v5967_v23 = vld [vmem:[%s8449_s1 + $0x480] ss:$16 sps:$4 sm:$0xff]  }
  0x69   : > { %1784 = vmatpush1.bf16.msra.mxu0 %v5874_v24  ;;  %1956 = vmatpush1.bf16.msra.mxu1 %v5877_v25  ;;  %v5970_v24 = vld [vmem:[%s8449_s1 + $0x488] ss:$16 sps:$4 sm:$0xff]   ;;  %v5975_v25 = vld [vmem:[%s8449_s1 + $0x4a4] ss:$16 sps:$4 sm:$0xff]  }
  0x6a   : > { %1785 = vmatprep.subr.bf16.mxu0 %v5882_v26  ;;  %1957 = vmatprep.subr.bf16.mxu1 %v5885_v27  ;;  %v5978_v26 = vld [vmem:[%s8449_s1 + $0x4ac] ss:$16 sps:$4 sm:$0xff]   ;;  %v5973_v27 = vld [vmem:[%s8449_s1 + $0x4a0] ss:$16 sps:$4 sm:$0xff]  }
  0x6d   : > { %1786 = vmatpush1.bf16.msra.mxu0 %v5880_v28  ;;  %1958 = vmatpush1.bf16.msra.mxu1 %v5883_v29  ;;  %v5976_v28 = vld [vmem:[%s8449_s1 + $0x4a8] ss:$16 sps:$4 sm:$0xff]   ;;  %v5981_v29 = vld [vmem:[%s8449_s1 + $0x4c4] ss:$16 sps:$4 sm:$0xff]  }
  0x6e   : > { %1787 = vmatprep.subr.bf16.mxu0 %v5888_v31  ;;  %1959 = vmatprep.subr.bf16.mxu1 %v5891_v32  ;;  %v5979_v31 = vld [vmem:[%s8449_s1 + $0x4c0] ss:$16 sps:$4 sm:$0xff]   ;;  %v5982_v32 = vld [vmem:[%s8449_s1 + $0x4c8] ss:$16 sps:$4 sm:$0xff]  }
  0x71   : > { %1788 = vmatpush1.bf16.msra.mxu0 %v5886_v33  ;;  %1960 = vmatpush1.bf16.msra.mxu1 %v5889_v34  ;;  %v5987_v33 = vld [vmem:[%s8449_s1 + $0x4e4] ss:$16 sps:$4 sm:$0xff]   ;;  %v5990_v34 = vld [vmem:[%s8449_s1 + $0x4ec] ss:$16 sps:$4 sm:$0xff]  }
  0x72   : > { %1789 = vmatprep.subr.bf16.mxu0 %v5894_v35  ;;  %1961 = vmatprep.subr.bf16.mxu1 %v5897_v36  ;;  %v5985_v35 = vld [vmem:[%s8449_s1 + $0x4e0] ss:$16 sps:$4 sm:$0xff]   ;;  %v5988_v36 = vld [vmem:[%s8449_s1 + $0x4e8] ss:$16 sps:$4 sm:$0xff]  }
  0x75   : > { %1790 = vmatpush1.bf16.msra.mxu0 %v5892_v37  ;;  %1962 = vmatpush1.bf16.msra.mxu1 %v5895_v38  ;;  %v5993_v37 = vld [vmem:[%s8449_s1 + $0x504] ss:$16 sps:$4 sm:$0xff]   ;;  %v5996_v38 = vld [vmem:[%s8449_s1 + $0x50c] ss:$16 sps:$4 sm:$0xff]  }
  0x76   : > { %1791 = vmatprep.subr.bf16.mxu0 %v5900_v39  ;;  %1963 = vmatprep.subr.bf16.mxu1 %v5903_v40  ;;  %v5991_v39 = vld [vmem:[%s8449_s1 + $0x500] ss:$16 sps:$4 sm:$0xff]   ;;  %v5994_v40 = vld [vmem:[%s8449_s1 + $0x508] ss:$16 sps:$4 sm:$0xff]  }
  0x79   : > { %1792 = vmatpush1.bf16.msra.mxu0 %v5898_v41  ;;  %1964 = vmatpush1.bf16.msra.mxu1 %v5901_v42  ;;  %v5999_v41 = vld [vmem:[%s8449_s1 + $0x524] ss:$16 sps:$4 sm:$0xff]   ;;  %v6002_v42 = vld [vmem:[%s8449_s1 + $0x52c] ss:$16 sps:$4 sm:$0xff]  }
  0x7a   : > { %1793 = vmatprep.subr.bf16.mxu0 %v5906_v43  ;;  %1965 = vmatprep.subr.bf16.mxu1 %v5909_v44  ;;  %v5997_v43 = vld [vmem:[%s8449_s1 + $0x520] ss:$16 sps:$4 sm:$0xff]   ;;  %v6000_v44 = vld [vmem:[%s8449_s1 + $0x528] ss:$16 sps:$4 sm:$0xff]  }
  0x7d   : > { %1794 = vmatpush1.bf16.msra.mxu0 %v5904_v45  ;;  %1966 = vmatpush1.bf16.msra.mxu1 %v5907_v46  ;;  %v6005_v45 = vld [vmem:[%s8449_s1 + $0x544] ss:$16 sps:$4 sm:$0xff]   ;;  %v6008_v46 = vld [vmem:[%s8449_s1 + $0x54c] ss:$16 sps:$4 sm:$0xff]  }
  0x7e   : > { %1795 = vmatprep.subr.bf16.mxu0 %v5912_v47  ;;  %1967 = vmatprep.subr.bf16.mxu1 %v5915_v48  ;;  %v6003_v47 = vld [vmem:[%s8449_s1 + $0x540] ss:$16 sps:$4 sm:$0xff]   ;;  %v6006_v48 = vld [vmem:[%s8449_s1 + $0x548] ss:$16 sps:$4 sm:$0xff]  }
  0x81   : > { %1796 = vmatpush1.bf16.msra.mxu0 %v5910_v49  ;;  %1968 = vmatpush1.bf16.msra.mxu1 %v5913_v50  ;;  %v6011_v49 = vld [vmem:[%s8449_s1 + $0x564] ss:$16 sps:$4 sm:$0xff]   ;;  %v6014_v50 = vld [vmem:[%s8449_s1 + $0x56c] ss:$16 sps:$4 sm:$0xff]  }
  0x82   : > { %1797 = vmatprep.subr.bf16.mxu0 %v5918_v51  ;;  %1969 = vmatprep.subr.bf16.mxu1 %v5921_v52  ;;  %v6009_v51 = vld [vmem:[%s8449_s1 + $0x560] ss:$16 sps:$4 sm:$0xff]   ;;  %v6012_v52 = vld [vmem:[%s8449_s1 + $0x568] ss:$16 sps:$4 sm:$0xff]  }
  0x85   : > { %1798 = vmatpush1.bf16.msra.mxu0 %v5916_v53  ;;  %1970 = vmatpush1.bf16.msra.mxu1 %v5919_v54  ;;  %v6017_v53 = vld [vmem:[%s8449_s1 + $0x584] ss:$16 sps:$4 sm:$0xff]   ;;  %v6020_v54 = vld [vmem:[%s8449_s1 + $0x58c] ss:$16 sps:$4 sm:$0xff]  }
  0x86   : > { %1799 = vmatprep.subr.bf16.mxu0 %v5924_v55  ;;  %1971 = vmatprep.subr.bf16.mxu1 %v5927_v56  ;;  %v6015_v55 = vld [vmem:[%s8449_s1 + $0x580] ss:$16 sps:$4 sm:$0xff]   ;;  %v6018_v56 = vld [vmem:[%s8449_s1 + $0x588] ss:$16 sps:$4 sm:$0xff]  }
  0x89   : > { %1800 = vmatpush1.bf16.msra.mxu0 %v5922_v57  ;;  %1972 = vmatpush1.bf16.msra.mxu1 %v5925_v58  ;;  %v6023_v57 = vld [vmem:[%s8449_s1 + $0x5a4] ss:$16 sps:$4 sm:$0xff]   ;;  %v6026_v58 = vld [vmem:[%s8449_s1 + $0x5ac] ss:$16 sps:$4 sm:$0xff]  }
  0x8a   : > { %1801 = vmatprep.subr.bf16.mxu0 %v5930_v59  ;;  %1973 = vmatprep.subr.bf16.mxu1 %v5933_v60  ;;  %v6021_v59 = vld [vmem:[%s8449_s1 + $0x5a0] ss:$16 sps:$4 sm:$0xff]   ;;  %v6024_v60 = vld [vmem:[%s8449_s1 + $0x5a8] ss:$16 sps:$4 sm:$0xff]  }
  0x8d   : > { %1802 = vmatpush1.bf16.msra.mxu0 %v5928_v61  ;;  %1974 = vmatpush1.bf16.msra.mxu1 %v5931_v62  ;;  %v6029_v61 = vld [vmem:[%s8449_s1 + $0x5c4] ss:$16 sps:$4 sm:$0xff]   ;;  %v6032_v62 = vld [vmem:[%s8449_s1 + $0x5cc] ss:$16 sps:$4 sm:$0xff]  }
  0x8e   : > { %1803 = vmatprep.subr.bf16.mxu0 %v5936_v63  ;;  %1975 = vmatprep.subr.bf16.mxu1 %v5939_v0  ;;  %v6027_v63 = vld [vmem:[%s8449_s1 + $0x5c0] ss:$16 sps:$4 sm:$0xff]   ;;  %v6030_v0 = vld [vmem:[%s8449_s1 + $0x5c8] ss:$16 sps:$4 sm:$0xff]  }
  0x91   : > { %1804 = vmatpush1.bf16.msra.mxu0 %v5934_v1  ;;  %1976 = vmatpush1.bf16.msra.mxu1 %v5937_v2  ;;  %v6035_v1 = vld [vmem:[%s8449_s1 + $0x5e4] ss:$16 sps:$4 sm:$0xff]   ;;  %v6038_v2 = vld [vmem:[%s8449_s1 + $0x5ec] ss:$16 sps:$4 sm:$0xff]  }
  0x92   : > { %1816 = vmatprep.subr.bf16.mxu0 %v5945_v3  ;;  %1988 = vmatprep.subr.bf16.mxu1 %v5948_v4  ;;  %v6033_v3 = vld [vmem:[%s8449_s1 + $0x5e0] ss:$16 sps:$4 sm:$0xff]   ;;  %v6036_v4 = vld [vmem:[%s8449_s1 + $0x5e8] ss:$16 sps:$4 sm:$0xff]  }
  0x94   : > { %1806 = vmatmul.mubr.bf16.vlgmr.msra.gmra.mrb[0].mxu0 %v5940_v5  ;;  %1978 = vmatmul.mubr.bf16.vlgmr.msra.gmra.mrb[0].mxu1 %v5940_v5  ;;  %v6044_v5 = vld [vmem:[%s8449_s1 + $0x604] ss:$16 sps:$4 sm:$0xff]  }
  0x95   : > { %1817 = vmatpush1.bf16.msra.mxu0 %v5943_v6  ;;  %1989 = vmatpush1.bf16.msra.mxu1 %v5946_v7  ;;  %v6047_v6 = vld [vmem:[%s8449_s1 + $0x60c] ss:$16 sps:$4 sm:$0xff]  }
  0x96   : > { %1818 = vmatprep.subr.bf16.mxu0 %v5951_v8  ;;  %1990 = vmatprep.subr.bf16.mxu1 %v5954_v9  ;;  %v6039_v7 = vld [vmem:[%s6860_s27 + $0x10] ss:$28 sps:$4 sm:$0xff]   ;;  %v6045_v9 = vld [vmem:[%s8449_s1 + $0x608] ss:$16 sps:$4 sm:$0xff]  }
  0x97   : > { %1848 = vmatprep.mubr.bf16.mxu0 %v6041_v12  ;;  %2020 = vmatprep.mubr.bf16.mxu1 %v6041_v12  ;;  %v6042_v8 = vld [vmem:[%s8449_s1 + $0x600] ss:$16 sps:$4 sm:$0xff]   ;;  %v6048_v12 = vld [vmem:[%s6860_s27 + $0x18] ss:$28 sps:$4 sm:$0xff]   ;;  %s7559_s27 = scalar_lea.vmem [#allocation4], %s4965_s20 }
  0x98   : > { %s4867_s19 = sshll.u32 %s7559_s27, 4  ;;  %s8348_s19 = int_to_ptr.vmem [resolvable:$true] %s4867_s19 }
  0x99   : > { %1819 = vmatpush1.bf16.msra.mxu0 %v5949_v10  ;;  %1991 = vmatpush1.bf16.msra.mxu1 %v5952_v11  ;;  %v6049_v10 = vld [vmem:[%s8451_s3 + $0x40] sm:$0xff]   ;;  %v6589_v11 = vmov 0   ;;  %s6493_s22 = scalar_lea.vmem %s8348_s19, 256  ;;  %p6500_p0 = scmp.lt.s32.totalorder %s8348_s19, %s6498_s15 }
  0x9a   : > { %1820 = vmatprep.subr.bf16.mxu0 %v5957_v13  ;;  %1992 = vmatprep.subr.bf16.mxu1 %v5960_v14  ;;  %v6050_v13 = vld [vmem:[%s8451_s3] sm:$0xff]   ;;  %v6051_v14 = vld [vmem:[%s8451_s3 + $0x48] sm:$0xff]   ;;  %p6494_p11 = scmp.ne.s32.totalorder %s8348_s19, %s6493_s22  ;;  %p6501_p1 = scmp.lt.s32.totalorder %s6499_s28, %s6493_s22 }
  0x9c   : > { %p6495_p12 = pnand %p6494_p11, %p6711_p5  ;;  %p6502_p2 = por %p6501_p1, %p6500_p0 }
  0x9d   : > { %1821 = vmatpush1.bf16.msra.mxu0 %v5955_v15  ;;  %1993 = vmatpush1.bf16.msra.mxu1 %v5958_v16  ;;  %v6052_v15 = vld [vmem:[%s8451_s3 + $0x8] sm:$0xff]   ;;  %v6053_v16 = vld [vmem:[%s8451_s3 + $0x50] sm:$0xff]  }
  0x9e   : > { %1822 = vmatprep.subr.bf16.mxu0 %v5963_v17  ;;  %1994 = vmatprep.subr.bf16.mxu1 %v5966_v18  ;;  %v6054_v17 = vld [vmem:[%s8451_s3 + $0x10] sm:$0xff]   ;;  %v6055_v18 = vld [vmem:[%s8451_s3 + $0x58] sm:$0xff]   ;;  %p6496_p13 = pneg %p6495_p12 }
  0xa0   : > { %p6503_p3 = pnand %p6502_p2, %p6496_p13 }
  0xa1   : > { %1823 = vmatpush1.bf16.msra.mxu0 %v5961_v19  ;;  %1995 = vmatpush1.bf16.msra.mxu1 %v5964_v20  ;;  %v6056_v19 = vld [vmem:[%s8451_s3 + $0x18] sm:$0xff]   ;;  %v6057_v20 = vld [vmem:[%s8451_s3 + $0x60] sm:$0xff]  }
  0xa2   : > { %1824 = vmatprep.subr.bf16.mxu0 %v5969_v21  ;;  %1996 = vmatprep.subr.bf16.mxu1 %v5972_v22  ;;  %v6058_v21 = vld [vmem:[%s8451_s3 + $0x20] sm:$0xff]   ;;  %v6059_v22 = vld [vmem:[%s8451_s3 + $0x68] sm:$0xff]  }
  0xa5   : > { %1825 = vmatpush1.bf16.msra.mxu0 %v5967_v23  ;;  %1997 = vmatpush1.bf16.msra.mxu1 %v5970_v24  ;;  %v6060_v23 = vld [vmem:[%s8451_s3 + $0x28] sm:$0xff]   ;;  %v6061_v24 = vld [vmem:[%s8451_s3 + $0x70] sm:$0xff]  }
  0xa6   : > { %1826 = vmatprep.subr.bf16.mxu0 %v5975_v25  ;;  %1998 = vmatprep.subr.bf16.mxu1 %v5978_v26  ;;  %v6062_v25 = vld [vmem:[%s8451_s3 + $0x30] sm:$0xff]   ;;  %v6063_v26 = vld [vmem:[%s8451_s3 + $0x78] sm:$0xff]  }
  0xa9   : > { %1827 = vmatpush1.bf16.msra.mxu0 %v5973_v27  ;;  %1999 = vmatpush1.bf16.msra.mxu1 %v5976_v28  ;;  %v6064_v27 = vld [vmem:[%s8451_s3 + $0x38] sm:$0xff]   ;;  %v6065_v28 = vld [vmem:[%s8451_s3 + $0xc0] sm:$0xff]  }
  0xaa   : > { %1828 = vmatprep.subr.bf16.mxu0 %v5981_v29  ;;  %2000 = vmatprep.subr.bf16.mxu1 %v5984_v30  ;;  %v691_v29 = vlaneseq }
  0xac   : > { %v7377_v30 = vshrl.u32 %v691_v29, 7  ;;  %v6089_v29 = vld [vmem:[%s8455_s7] sm:$0xff]  }
  0xad   : > { %1829 = vmatpush1.bf16.msra.mxu0 %v5979_v31  ;;  %2001 = vmatpush1.bf16.msra.mxu1 %v5982_v32 }
  0xae   : > { %1830 = vmatprep.subr.bf16.mxu0 %v5987_v33  ;;  %2002 = vmatprep.subr.bf16.mxu1 %v5990_v34  ;;  %v7380_v31 = vsub.s32 0, %v7377_v30  ;;  %v7383_v32 = vsub.s32 2, %v7377_v30  ;;  %v689_v33 = vld [vmem:[%s8450_s2] sm:$0xf]  ;;  %v7389_v34 = vsub.s32 1, %v7377_v30 }
  0xb1   : > { %1831 = vmatpush1.bf16.msra.mxu0 %v5985_v35  ;;  %2003 = vmatpush1.bf16.msra.mxu1 %v5988_v36  ;;  %v7392_v35 = vsub.s32 3, %v7377_v30  ;;  %v694_v36 = vrot.slane %v689_v33, %v7380_v31 }
  0xb2   : > { %1832 = vmatprep.subr.bf16.mxu0 %v5993_v37  ;;  %2004 = vmatprep.subr.bf16.mxu1 %v5996_v38  ;;  %v702_v37 = vrot.slane %v689_v33, %v7383_v32  ;;  %v698_v38 = vrot.slane %v689_v33, %v7389_v34 }
  0xb5   : > { %1833 = vmatpush1.bf16.msra.mxu0 %v5991_v39  ;;  %2005 = vmatpush1.bf16.msra.mxu1 %v5994_v40  ;;  %v706_v39 = vrot.slane %v689_v33, %v7392_v35  ;;  %v6090_v33 = vld [vmem:[%s8455_s7 + $0x8] sm:$0xff]  }
  0xb6   : > { %1834 = vmatprep.subr.bf16.mxu0 %v5999_v41  ;;  %2006 = vmatprep.subr.bf16.mxu1 %v6002_v42 }
  0xb9   : > { %1835 = vmatpush1.bf16.msra.mxu0 %v5997_v43  ;;  %2007 = vmatpush1.bf16.msra.mxu1 %v6000_v44 }
  0xba   : > { %1836 = vmatprep.subr.bf16.mxu0 %v6005_v45  ;;  %2008 = vmatprep.subr.bf16.mxu1 %v6008_v46 }
  0xbd   : > { %1837 = vmatpush1.bf16.msra.mxu0 %v6003_v47  ;;  %2009 = vmatpush1.bf16.msra.mxu1 %v6006_v48 }
  0xbe   : > { %1838 = vmatprep.subr.bf16.mxu0 %v6011_v49  ;;  %2010 = vmatprep.subr.bf16.mxu1 %v6014_v50 }
  0xc1   : > { %1839 = vmatpush1.bf16.msra.mxu0 %v6009_v51  ;;  %2011 = vmatpush1.bf16.msra.mxu1 %v6012_v52 }
  0xc2   : > { %1840 = vmatprep.subr.bf16.mxu0 %v6017_v53  ;;  %2012 = vmatprep.subr.bf16.mxu1 %v6020_v54 }
  0xc5   : > { %1841 = vmatpush1.bf16.msra.mxu0 %v6015_v55  ;;  %2013 = vmatpush1.bf16.msra.mxu1 %v6018_v56 }
  0xc6   : > { %1842 = vmatprep.subr.bf16.mxu0 %v6023_v57  ;;  %2014 = vmatprep.subr.bf16.mxu1 %v6026_v58 }
  0xc9   : > { %1843 = vmatpush1.bf16.msra.mxu0 %v6021_v59  ;;  %2015 = vmatpush1.bf16.msra.mxu1 %v6024_v60 }
  0xca   : > { %1844 = vmatprep.subr.bf16.mxu0 %v6029_v61  ;;  %2016 = vmatprep.subr.bf16.mxu1 %v6032_v62 }
  0xcd   : > { %1845 = vmatpush1.bf16.msra.mxu0 %v6027_v63  ;;  %2017 = vmatpush1.bf16.msra.mxu1 %v6030_v0 }
  0xce   : > { %1846 = vmatprep.subr.bf16.mxu0 %v6035_v1  ;;  %2018 = vmatprep.subr.bf16.mxu1 %v6038_v2 }
  0xd1   : > { %1847 = vmatpush1.bf16.msra.mxu0 %v6033_v3  ;;  %2019 = vmatpush1.bf16.msra.mxu1 %v6036_v4  ;;  %v6066_v4 = vld [vmem:[%s8451_s3 + $0x80] sm:$0xff]  }
  0xd2   : > { %1859 = vmatprep.subr.bf16.mxu0 %v6044_v5  ;;  %2031 = vmatprep.subr.bf16.mxu1 %v6047_v6  ;;  %v6067_v5 = vld [vmem:[%s8451_s3 + $0xc8] sm:$0xff]  }
  0xd3   : > { %v6068_v6 = vld [vmem:[%s8451_s3 + $0x88] sm:$0xff]  }
  0xd4   : > { %1849 = vmatmul.mubr.bf16.vlgmr.msra.gmra.mrb[0].mxu0 %v6039_v7  ;;  %2021 = vmatmul.mubr.bf16.vlgmr.msra.gmra.mrb[0].mxu1 %v6039_v7  ;;  %v6069_v7 = vld [vmem:[%s8451_s3 + $0xd0] sm:$0xff]  }
  0xd5   : > { %1860 = vmatpush1.bf16.msra.mxu0 %v6042_v8  ;;  %2032 = vmatpush1.bf16.msra.mxu1 %v6045_v9  ;;  %v6070_v8 = vld [vmem:[%s8451_s3 + $0x90] sm:$0xff]   ;;  %v6071_v9 = vld [vmem:[%s8451_s3 + $0xd8] sm:$0xff]  }
  0xd6   : > { %1891 = vmatprep.mubr.bf16.mxu0 %v6589_v11  ;;  %2063 = vmatprep.mubr.bf16.mxu1 %v6589_v11 }
  0xd7   : > { %5489 = vmatprep.subr.bf16.mxu1 %v6049_v10  ;;  %v6072_v10 = vld [vmem:[%s8451_s3 + $0x98] sm:$0xff]  }
  0xe0   : > { %5171 = vmatmul.mubr.msk.bf16.vlgmr.msra.gmra.mrb[0].mxu0 %vm1726_vm0, %v6048_v12  ;;  %5172 = vmatmul.mubr.msk.bf16.vlgmr.msra.gmra.mrb[0].mxu1 %vm1726_vm0, %v6048_v12  ;;  %v6073_v12 = vld [vmem:[%s8451_s3 + $0xe0] sm:$0xff]  }
  0xe1   : > { %5490 = vmatpush3.bf16.msra.mxu1 %v6050_v13  ;;  %v6074_v13 = vld [vmem:[%s8451_s3 + $0xa0] sm:$0xff]  }
  0xe2   : > { %5491 = vmatprep.subr.bf16.mxu1 %v6051_v14  ;;  %v6075_v14 = vld [vmem:[%s8451_s3 + $0xe8] sm:$0xff]  }
  0xe5   : > { %5492 = vmatpush3.bf16.msra.mxu1 %v6052_v15  ;;  %v6076_v15 = vld [vmem:[%s8451_s3 + $0xa8] sm:$0xff]  }
  0xe6   : > { %5493 = vmatprep.subr.bf16.mxu1 %v6053_v16  ;;  %v6077_v16 = vld [vmem:[%s8451_s3 + $0xf0] sm:$0xff]  }
  0xe9   : > { %5494 = vmatpush3.bf16.msra.mxu1 %v6054_v17  ;;  %v6078_v17 = vld [vmem:[%s8451_s3 + $0xb0] sm:$0xff]  }
  0xea   : > { %5495 = vmatprep.subr.bf16.mxu1 %v6055_v18  ;;  %v6079_v18 = vld [vmem:[%s8451_s3 + $0xf8] sm:$0xff]  }
  0xed   : > { %5496 = vmatpush3.bf16.msra.mxu1 %v6056_v19  ;;  %v6080_v19 = vld [vmem:[%s8451_s3 + $0xb8] sm:$0xff]  }
  0xee   : > { %5497 = vmatprep.subr.bf16.mxu1 %v6057_v20  ;;  %v6081_v20 = vld [vmem:[%s8453_s5] sm:$0xff]  }
  0xf1   : > { %5498 = vmatpush3.bf16.msra.mxu1 %v6058_v21  ;;  %v6590_v21 = vmov 0.0  }
  0xf2   : > { %5499 = vmatprep.subr.bf16.mxu1 %v6059_v22  ;;  %5595 = vmatprep.subr.bf16.mxu0 %v6590_v21  ;;  %v6082_v22 = vld [vmem:[%s8453_s5 + $0x8] sm:$0xff]  }
  0xf3   : > { %5596 = vmatpush3.bf16.msra.mxu0 %v6081_v20  ;;  %5611 = vmatprep.mubr.msk.bf16.mxu0 %vm6591_vm1, %v6590_v21 }
  0xf4   : > { %5597 = vmatprep.subr.bf16.mxu0 %v6590_v21 }
  0xf5   : > { %5500 = vmatpush3.bf16.msra.mxu1 %v6060_v23  ;;  %v6083_v23 = vld [vmem:[%s8453_s5 + $0x10] sm:$0xff]  }
  0xf6   : > { %5501 = vmatprep.subr.bf16.mxu1 %v6061_v24  ;;  %v6084_v24 = vld [vmem:[%s8453_s5 + $0x18] sm:$0xff]  }
  0xf7   : > { %5598 = vmatpush3.bf16.msra.mxu0 %v6082_v22  ;;  %v6106_v22 = vld [vmem:[%s8457_s9 + $0x28] ss:$16 sps:$4 sm:$0xff]  }
  0xf8   : > { %5599 = vmatprep.subr.bf16.mxu0 %v6590_v21 }
  0xf9   : > { %5502 = vmatpush3.bf16.msra.mxu1 %v6062_v25  ;;  %v6085_v25 = vld [vmem:[%s8453_s5 + $0x20] sm:$0xff]  }
  0xfa   : > { %5503 = vmatprep.subr.bf16.mxu1 %v6063_v26  ;;  %v6086_v26 = vld [vmem:[%s8453_s5 + $0x28] sm:$0xff]  }
  0xfb   : > { %5600 = vmatpush3.bf16.msra.mxu0 %v6083_v23  ;;  %v6114_v23 = vld [vmem:[%s8457_s9 + $0x4c] ss:$16 sps:$4 sm:$0xff]  }
  0xfc   : > { %5601 = vmatprep.subr.bf16.mxu0 %v6590_v21 }
  0xfd   : > { %5504 = vmatpush3.bf16.msra.mxu1 %v6064_v27  ;;  %v6087_v27 = vld [vmem:[%s8453_s5 + $0x30] sm:$0xff]  }
  0xfe   : > { %5511 = vmatprep.subr.bf16.mxu1 %v6065_v28  ;;  %v6088_v28 = vld [vmem:[%s8453_s5 + $0x38] sm:$0xff]  }
  0xff   : > { %5602 = vmatpush3.bf16.msra.mxu0 %v6084_v24  ;;  %v6112_v24 = vld [vmem:[%s8457_s9 + $0x48] ss:$16 sps:$4 sm:$0xff]  }
 0x100   : > { %5603 = vmatprep.subr.bf16.mxu0 %v6590_v21 }
 0x103   : > { %5604 = vmatpush3.bf16.msra.mxu0 %v6085_v25  ;;  %v6120_v25 = vld [vmem:[%s8457_s9 + $0x6c] ss:$16 sps:$4 sm:$0xff]  }
 0x104   : > { %5605 = vmatprep.subr.bf16.mxu0 %v6590_v21 }
 0x107   : > { %5606 = vmatpush3.bf16.msra.mxu0 %v6086_v26  ;;  %v6126_v26 = vld [vmem:[%s8457_s9 + $0x8c] ss:$16 sps:$4 sm:$0xff]  }
 0x108   : > { %5607 = vmatprep.subr.bf16.mxu0 %v6590_v21 }
 0x10b   : > { %5608 = vmatpush3.bf16.msra.mxu0 %v6087_v27  ;;  %v6124_v27 = vld [vmem:[%s8457_s9 + $0x88] ss:$16 sps:$4 sm:$0xff]  }
 0x10c   : > { %5609 = vmatprep.subr.bf16.mxu0 %v6590_v21 }
 0x10f   : > { %5610 = vmatpush3.bf16.msra.mxu0 %v6088_v28  ;;  %v6132_v28 = vld [vmem:[%s8457_s9 + $0xac] ss:$16 sps:$4 sm:$0xff]  }
 0x1b3   : > { %v1893_v40 = vpop.f32.mrb[0].mxu0  ;;  %v2065_v41 = vpop.f32.mrb[0].mxu1 }
 0x1b4   : > { %v5635_v42 = vadd.f32 %v1893_v40, %v694_v36  ;;  %v5639_v43 = vadd.f32 %v2065_v41, %v702_v37  ;;  %v1895_v44 = vpop.f32.mrb[1].mxu0  ;;  %v2067_v45 = vpop.f32.mrb[1].mxu1 }
 0x1b5   : > { %v5636_v46 = vadd.f32 %v1895_v44, %v698_v38  ;;  %v5640_v47 = vadd.f32 %v2067_v45, %v706_v39  ;;  %v1897_v48 = vpop.f32.mrb[2].mxu0  ;;  %v2069_v49 = vpop.f32.mrb[2].mxu1 }
 0x1b6   : > { %v5637_v50 = vadd.f32 %v1897_v48, %v694_v36  ;;  %v5641_v51 = vadd.f32 %v2069_v49, %v702_v37  ;;  %v1899_v52 = vpop.f32.mrb[3].mxu0  ;;  %v2071_v53 = vpop.f32.mrb[3].mxu1  ;;  %v2074_v56 = vmax.f32 %v5635_v42, 0.0  ;;  %v2076_v57 = vmax.f32 %v5639_v43, 0.0  ;;  %v6091_v36 = vld [vmem:[%s8455_s7 + $0x10] sm:$0xff]   ;;  %v6092_v37 = vld [vmem:[%s8455_s7 + $0x18] sm:$0xff]  }
 0x1b7   : > { %v5638_v54 = vadd.f32 %v1899_v52, %v698_v38  ;;  %v5642_v55 = vadd.f32 %v2071_v53, %v706_v39  ;;  %v2075_v60 = vmax.f32 %v5636_v46, 0.0  ;;  %v2077_v61 = vmax.f32 %v5640_v47, 0.0  ;;  %v6093_v38 = vld [vmem:[%s8455_s7 + $0x20] sm:$0xff]   ;;  %v6094_v39 = vld [vmem:[%s8455_s7 + $0x28] sm:$0xff]  }
 0x1b8   : > { %v2078_v58 = vmax.f32 %v5637_v50, 0.0  ;;  %v2080_v59 = vmax.f32 %v5641_v51, 0.0  ;;  %v5173_v46 = vld [vmem:[%s8452_s4] ss:$0 sm:$0xff] }
 0x1b9   : > { %v2079_v62 = vmax.f32 %v5638_v54, 0.0  ;;  %v2081_v63 = vmax.f32 %v5642_v55, 0.0 }
 0x1ba   : > { %v2082_v0 = vpack.c.bf16 %v2078_v58, %v2074_v56  ;;  %v2084_v1 = vpack.c.bf16 %v2080_v59, %v2076_v57 }
 0x1bb   : > { %v2083_v2 = vpack.c.bf16 %v2079_v62, %v2075_v60  ;;  %v2085_v3 = vpack.c.bf16 %v2081_v63, %v2077_v61  ;;  %v6095_v60 = vld [vmem:[%s8455_s7 + $0x30] sm:$0xff]   ;;  %v6096_v61 = vld [vmem:[%s8455_s7 + $0x38] sm:$0xff]  }
 0x1bc   : > { %v6097_v62 = vld [vmem:[%s8457_s9] ss:$16 sps:$4 sm:$0xff]   ;;  %v6099_v63 = vld [vmem:[%s8457_s9 + $0x4] ss:$16 sps:$4 sm:$0xff]  }
 0x1bd   : > { %2381 = vmatprep.mubr.bf16.mxu1 %v2083_v2  ;;  %2878 = vmatprep.subr.bf16.mxu0 %v6099_v63  ;;  %v6103_v2 = vld [vmem:[%s8457_s9 + $0x20] ss:$16 sps:$4 sm:$0xff]  }
 0x1be   : > { %2382 = vmatmul.mubr.bf16.vlgmr.msra.gmra.mrb[4].mxu1 %v2082_v0  ;;  %v6102_v0 = vld [vmem:[%s8457_s9 + $0xc] ss:$16 sps:$4 sm:$0xff]  }
 0x1bf   : > { %5512 = vmatpush3.bf16.msra.mxu1 %v6066_v4  ;;  %2422 = vmatprep.mubr.bf16.mxu1 %v2085_v3  ;;  %v6111_v3 = vld [vmem:[%s8457_s9 + $0x44] ss:$16 sps:$4 sm:$0xff]   ;;  %v6109_v4 = vld [vmem:[%s8457_s9 + $0x40] ss:$16 sps:$4 sm:$0xff]  }
 0x1c0   : > { %5513 = vmatprep.subr.bf16.mxu1 %v6067_v5  ;;  %v6117_v5 = vld [vmem:[%s8457_s9 + $0x64] ss:$16 sps:$4 sm:$0xff]   ;;  %v6157_v63 = vld [vmem:[%s8459_s11 + $0x70] ss:$28 sps:$4 sm:$0xff]  }
 0x1c3   : > { %5514 = vmatpush3.bf16.msra.mxu1 %v6068_v6  ;;  %v6115_v6 = vld [vmem:[%s8457_s9 + $0x60] ss:$16 sps:$4 sm:$0xff]  }
 0x1c4   : > { %5515 = vmatprep.subr.bf16.mxu1 %v6069_v7  ;;  %v6123_v7 = vld [vmem:[%s8457_s9 + $0x84] ss:$16 sps:$4 sm:$0xff]  }
 0x1c7   : > { %5516 = vmatpush3.bf16.msra.mxu1 %v6070_v8  ;;  %v6121_v8 = vld [vmem:[%s8457_s9 + $0x80] ss:$16 sps:$4 sm:$0xff]  }
 0x1c8   : > { %5517 = vmatprep.subr.bf16.mxu1 %v6071_v9  ;;  %v6129_v9 = vld [vmem:[%s8457_s9 + $0xa4] ss:$16 sps:$4 sm:$0xff]  }
 0x1cb   : > { %5518 = vmatpush3.bf16.msra.mxu1 %v6072_v10  ;;  %v6127_v10 = vld [vmem:[%s8457_s9 + $0xa0] ss:$16 sps:$4 sm:$0xff]  }
 0x1cc   : > { %5519 = vmatprep.subr.bf16.mxu1 %v6073_v12  ;;  %v5206_v12 = vld [vmem:[%s8454_s6] ss:$0 sm:$0xff] }
 0x1cf   : > { %5520 = vmatpush3.bf16.msra.mxu1 %v6074_v13 }
 0x1d0   : > { %5521 = vmatprep.subr.bf16.mxu1 %v6075_v14 }
 0x1d3   : > { %5522 = vmatpush3.bf16.msra.mxu1 %v6076_v15 }
 0x1d4   : > { %5523 = vmatprep.subr.bf16.mxu1 %v6077_v16 }
 0x1d7   : > { %5524 = vmatpush3.bf16.msra.mxu1 %v6078_v17 }
 0x1d8   : > { %5525 = vmatprep.subr.bf16.mxu1 %v6079_v18 }
 0x1db   : > { %5526 = vmatpush3.bf16.msra.mxu1 %v6080_v19  ;;  %v6100_v19 = vld [vmem:[%s8457_s9 + $0x8] ss:$16 sps:$4 sm:$0xff]  }
 0x1dc   : > { %5615 = vmatprep.subr.bf16.mxu1 %v6590_v21 }
 0x1de   : > { %2423 = vmatmul.mubr.bf16.vlgmr.msra.gmra.mrb[8].mxu1 %v2084_v1  ;;  %v6105_v1 = vld [vmem:[%s8457_s9 + $0x24] ss:$16 sps:$4 sm:$0xff]  }
 0x1df   : > { %5631 = vmatprep.mubr.msk.bf16.mxu1 %vm6591_vm1, %v6590_v21  ;;  %5616 = vmatpush3.bf16.msra.mxu1 %v6089_v29  ;;  %v6130_v29 = vld [vmem:[%s8457_s9 + $0xa8] ss:$16 sps:$4 sm:$0xff]  }
 0x1e0   : > { %5617 = vmatprep.subr.bf16.mxu1 %v6590_v21 }
 0x1e3   : > { %5618 = vmatpush3.bf16.msra.mxu1 %v6090_v33  ;;  %v6135_v33 = vld [vmem:[%s8457_s9 + $0xc4] ss:$16 sps:$4 sm:$0xff]  }
 0x1e4   : > { %5619 = vmatprep.subr.bf16.mxu1 %v6590_v21 }
 0x1e7   : > { %5620 = vmatpush3.bf16.msra.mxu1 %v6091_v36  ;;  %v6138_v36 = vld [vmem:[%s8457_s9 + $0xcc] ss:$16 sps:$4 sm:$0xff]  }
 0x1e8   : > { %5621 = vmatprep.subr.bf16.mxu1 %v6590_v21 }
 0x1eb   : > { %5622 = vmatpush3.bf16.msra.mxu1 %v6092_v37  ;;  %v6133_v37 = vld [vmem:[%s8457_s9 + $0xc0] ss:$16 sps:$4 sm:$0xff]  }
 0x1ec   : > { %5623 = vmatprep.subr.bf16.mxu1 %v6590_v21 }
 0x1ef   : > { %5624 = vmatpush3.bf16.msra.mxu1 %v6093_v38  ;;  %v6136_v38 = vld [vmem:[%s8457_s9 + $0xc8] ss:$16 sps:$4 sm:$0xff]  }
 0x1f0   : > { %5625 = vmatprep.subr.bf16.mxu1 %v6590_v21 }
 0x1f3   : > { %5626 = vmatpush3.bf16.msra.mxu1 %v6094_v39  ;;  %v6141_v39 = vld [vmem:[%s8457_s9 + $0xe4] ss:$16 sps:$4 sm:$0xff]  }
 0x1f4   : > { %5627 = vmatprep.subr.bf16.mxu1 %v6590_v21 }
 0x1f7   : > { %5628 = vmatpush3.bf16.msra.mxu1 %v6095_v60  ;;  %v6154_v60 = vld [vmem:[%s8459_s11 + $0x40] ss:$28 sps:$4 sm:$0xff]  }
 0x1f8   : > { %5629 = vmatprep.subr.bf16.mxu1 %v6590_v21  ;;  %v6108_v21 = vld [vmem:[%s8457_s9 + $0x2c] ss:$16 sps:$4 sm:$0xff]  }
 0x1fb   : > { %5630 = vmatpush3.bf16.msra.mxu1 %v6096_v61  ;;  %v6159_v61 = vld [vmem:[%s8459_s11 + $0x74] ss:$28 sps:$4 sm:$0xff]  }
 0x1fc   : > { %2921 = vmatprep.subr.bf16.mxu1 %v6102_v0  ;;  %v6160_v0 = vld [vmem:[%s8459_s11 + $0x78] ss:$28 sps:$4 sm:$0xff]  }
 0x291   : > { %v5505_v40 = vpop.f32.mrb[4].mxu1 }
 0x292   : > { %v5506_v41 = vpop.f32.mrb[5].mxu1 }
 0x293   : > { %v5507_v42 = vadd.f32 %v5506_v41, %v5505_v40  ;;  %v5508_v43 = vpop.f32.mrb[6].mxu1  ;;  %v6144_v40 = vld [vmem:[%s8457_s9 + $0xec] ss:$16 sps:$4 sm:$0xff]   ;;  %v6139_v41 = vld [vmem:[%s8457_s9 + $0xe0] ss:$16 sps:$4 sm:$0xff]  }
 0x294   : > { %v5509_v44 = vpop.f32.mrb[7].mxu1 }
 0x295   : > { %v5510_v45 = vadd.f32 %v5509_v44, %v5508_v43  ;;  %v2384_v49 = vadd.f32 %v5507_v42, %v5173_v46  ;;  %v6142_v42 = vld [vmem:[%s8457_s9 + $0xe8] ss:$16 sps:$4 sm:$0xff]   ;;  %v6147_v43 = vld [vmem:[%s8459_s11 + $0x4] ss:$28 sps:$4 sm:$0xff]  }
 0x296   : > { %v6150_v44 = vld [vmem:[%s8459_s11 + $0xc] ss:$28 sps:$4 sm:$0xff]  }
 0x297   : > { %v2387_v53 = vadd.f32 %v5510_v45, %v5173_v46  ;;  %v5215_v45 = vld [vmem:[%s8456_s8] ss:$0 sm:$0xff] }
 0x2b1   : > { %v5527_v47 = vpop.f32.mrb[8].mxu1 }
 0x2b2   : > { %v5528_v48 = vpop.f32.mrb[9].mxu1 }
 0x2b3   : > { %v5529_v50 = vadd.f32 %v5528_v48, %v5527_v47  ;;  %v5530_v51 = vpop.f32.mrb[10].mxu1 }
 0x2b4   : > { %v5531_v52 = vpop.f32.mrb[11].mxu1 }
 0x2b5   : > { %v2425_v54 = vadd.f32 %v5529_v50, %v2384_v49  ;;  %v5532_v55 = vadd.f32 %v5531_v52, %v5530_v51 }
 0x2b7   : > { %v2428_v56 = vadd.f32 %v5532_v55, %v2387_v53  ;;  %v2431_v57 = vmax.f32 %v2425_v54, 0.0  ;;  %v6145_v54 = vld [vmem:[%s8459_s11] ss:$28 sps:$4 sm:$0xff]   ;;  %v6148_v55 = vld [vmem:[%s8459_s11 + $0x8] ss:$28 sps:$4 sm:$0xff]  }
 0x2b9   : > { %v2432_v58 = vmax.f32 %v2428_v56, 0.0 }
 0x2bb   : > { %v2433_v59 = vpack.c.bf16 %v2432_v58, %v2431_v57  ;;  %v6153_v57 = vld [vmem:[%s8459_s11 + $0x3c] ss:$28 sps:$4 sm:$0xff]   ;;  %v6156_v58 = vld [vmem:[%s8459_s11 + $0x44] ss:$28 sps:$4 sm:$0xff]  }
 0x2bd   : > { %5612 = vmatmul.mubr.bf16.vlgmr.msra.gmra.mrb[4].mxu0 %v2433_v59  ;;  %v6151_v59 = vld [vmem:[%s8459_s11 + $0x38] ss:$28 sps:$4 sm:$0xff]  }
 0x2be   : > { %2910 = vmatprep.mubr.bf16.mxu0 %v6589_v11  ;;  %2879 = vmatpush1.bf16.msra.mxu0 %v6097_v62  ;;  %v6162_v62 = vld [vmem:[%s8459_s11 + $0x7c] ss:$28 sps:$4 sm:$0xff]  }
 0x2bf   : > { %2880 = vmatprep.subr.bf16.mxu0 %v6105_v1  ;;  %v6165_v1 = vld [vmem:[%s8459_s11 + $0xac] ss:$28 sps:$4 sm:$0xff]  }
 0x2c2   : > { %2881 = vmatpush1.bf16.msra.mxu0 %v6103_v2  ;;  %v6168_v2 = vld [vmem:[%s8459_s11 + $0xb4] ss:$28 sps:$4 sm:$0xff]  }
 0x2c3   : > { %2882 = vmatprep.subr.bf16.mxu0 %v6111_v3  ;;  %v6163_v3 = vld [vmem:[%s8459_s11 + $0xa8] ss:$28 sps:$4 sm:$0xff]  }
 0x2c6   : > { %2883 = vmatpush1.bf16.msra.mxu0 %v6109_v4  ;;  %v6166_v4 = vld [vmem:[%s8459_s11 + $0xb0] ss:$28 sps:$4 sm:$0xff]  }
 0x2c7   : > { %2884 = vmatprep.subr.bf16.mxu0 %v6117_v5  ;;  %v6171_v5 = vld [vmem:[%s8459_s11 + $0xe4] ss:$28 sps:$4 sm:$0xff]  }
 0x2ca   : > { %2885 = vmatpush1.bf16.msra.mxu0 %v6115_v6  ;;  %v6174_v6 = vld [vmem:[%s8459_s11 + $0xec] ss:$28 sps:$4 sm:$0xff]  }
 0x2cb   : > { %2886 = vmatprep.subr.bf16.mxu0 %v6123_v7  ;;  %v6169_v7 = vld [vmem:[%s8459_s11 + $0xe0] ss:$28 sps:$4 sm:$0xff]  }
 0x2ce   : > { %2887 = vmatpush1.bf16.msra.mxu0 %v6121_v8  ;;  %v6172_v8 = vld [vmem:[%s8459_s11 + $0xe8] ss:$28 sps:$4 sm:$0xff]  }
 0x2cf   : > { %2888 = vmatprep.subr.bf16.mxu0 %v6129_v9  ;;  %v6177_v9 = vld [vmem:[%s8459_s11 + $0x11c] ss:$28 sps:$4 sm:$0xff]  }
 0x2d2   : > { %2889 = vmatpush1.bf16.msra.mxu0 %v6127_v10  ;;  %v6180_v10 = vld [vmem:[%s8459_s11 + $0x124] ss:$28 sps:$4 sm:$0xff]  }
 0x2d3   : > { %2890 = vmatprep.subr.bf16.mxu0 %v6135_v33  ;;  %v6210_v33 = vld [vmem:[%s8459_s11 + $0x23c] ss:$28 sps:$4 sm:$0xff]  }
 0x2d6   : > { %2891 = vmatpush1.bf16.msra.mxu0 %v6133_v37  ;;  %v6208_v37 = vld [vmem:[%s8459_s11 + $0x238] ss:$28 sps:$4 sm:$0xff]  }
 0x2d7   : > { %2892 = vmatprep.subr.bf16.mxu0 %v6141_v39  ;;  %v6216_v39 = vld [vmem:[%s8459_s11 + $0x274] ss:$28 sps:$4 sm:$0xff]  }
 0x2da   : > { %2893 = vmatpush1.bf16.msra.mxu0 %v6139_v41  ;;  %v6214_v41 = vld [vmem:[%s8459_s11 + $0x270] ss:$28 sps:$4 sm:$0xff]  }
 0x2db   : > { %4421 = vmatprep.subr.bf16.mxu0 %v6147_v43  ;;  %v6222_v43 = vld [vmem:[%s8459_s11 + $0x2ac] ss:$28 sps:$4 sm:$0xff]  }
 0x390   : > { %v2539_v13 = vpop.f32.mrb[4].mxu0 }
 0x391   : > { %v2540_v14 = vadd.f32 %v5206_v12, %v2539_v13  ;;  %v5613_v15 = vpop.f32.mrb[5].mxu0  ;;  %v6178_v13 = vld [vmem:[%s8459_s11 + $0x120] ss:$28 sps:$4 sm:$0xff]  }
 0x392   : > { %v2542_v16 = vpop.f32.mrb[6].mxu0  ;;  %v6186_v15 = vld [vmem:[%s8459_s11 + $0x15c] ss:$28 sps:$4 sm:$0xff]  }
 0x393   : > { %2546 = vst [vmem:[%s7559_s27] sm:$0xff] %v2540_v14  ;;  %v2543_v17 = vadd.f32 %v5206_v12, %v2542_v16  ;;  %v5614_v18 = vpop.f32.mrb[7].mxu0  ;;  %v6175_v12 = vld [vmem:[%s8459_s11 + $0x118] ss:$28 sps:$4 sm:$0xff]   ;;  %v6181_v16 = vld [vmem:[%s8459_s11 + $0x150] ss:$28 sps:$4 sm:$0xff]  }
 0x394   : > { %v6189_v18 = vld [vmem:[%s8459_s11 + $0x18c] ss:$28 sps:$4 sm:$0xff]  }
 0x395   : > { %2547 = vst [vmem:[%s7559_s27 + $0x8] sm:$0xff] %v2543_v17  ;;  %v2548_v20 = vpack.c.bf16 %v2543_v17, %v2540_v14  ;;  %v6183_v14 = vld [vmem:[%s8459_s11 + $0x154] ss:$28 sps:$4 sm:$0xff]   ;;  %s5488_s27 = sshll.u32 %s6694_s17, 8 }
 0x396   : > { %v6184_v17 = vld [vmem:[%s8459_s11 + $0x158] ss:$28 sps:$4 sm:$0xff]   ;;  %s8357_s20 = scalar_lea.hbm %s8462_s14, %s5488_s27 }
 0x397   : > { %5632 = vmatmul.mubr.bf16.vlgmr.msra.gmra.mrb[12].mxu1 %v2548_v20  ;;  %v6187_v20 = vld [vmem:[%s8459_s11 + $0x188] ss:$28 sps:$4 sm:$0xff]  }
 0x398   : > { %2922 = vmatpush1.bf16.msra.mxu1 %v6100_v19  ;;  %2953 = vmatprep.mubr.bf16.mxu1 %v6589_v11  ;;  %v6118_v11 = vld [vmem:[%s8457_s9 + $0x68] ss:$16 sps:$4 sm:$0xff]   ;;  %v6192_v19 = vld [vmem:[%s8459_s11 + $0x194] ss:$28 sps:$4 sm:$0xff]  }
 0x399   : > { %2923 = vmatprep.subr.bf16.mxu1 %v6108_v21  ;;  %v6190_v21 = vld [vmem:[%s8459_s11 + $0x190] ss:$28 sps:$4 sm:$0xff]  }
 0x39c   : > { %2924 = vmatpush1.bf16.msra.mxu1 %v6106_v22  ;;  %v6195_v22 = vld [vmem:[%s8459_s11 + $0x1c4] ss:$28 sps:$4 sm:$0xff]  }
 0x39d   : > { %2925 = vmatprep.subr.bf16.mxu1 %v6114_v23  ;;  %v6198_v23 = vld [vmem:[%s8459_s11 + $0x1cc] ss:$28 sps:$4 sm:$0xff]  }
 0x3a0   : > { %2926 = vmatpush1.bf16.msra.mxu1 %v6112_v24  ;;  %v6193_v24 = vld [vmem:[%s8459_s11 + $0x1c0] ss:$28 sps:$4 sm:$0xff]  }
 0x3a1   : > { %2927 = vmatprep.subr.bf16.mxu1 %v6120_v25  ;;  %v6196_v25 = vld [vmem:[%s8459_s11 + $0x1c8] ss:$28 sps:$4 sm:$0xff]  }
 0x3a4   : > { %2928 = vmatpush1.bf16.msra.mxu1 %v6118_v11  ;;  %v6201_v11 = vld [vmem:[%s8459_s11 + $0x1fc] ss:$28 sps:$4 sm:$0xff]  }
 0x3a5   : > { %2929 = vmatprep.subr.bf16.mxu1 %v6126_v26  ;;  %v6204_v26 = vld [vmem:[%s8459_s11 + $0x204] ss:$28 sps:$4 sm:$0xff]  }
 0x3a8   : > { %2930 = vmatpush1.bf16.msra.mxu1 %v6124_v27  ;;  %v6199_v27 = vld [vmem:[%s8459_s11 + $0x1f8] ss:$28 sps:$4 sm:$0xff]  }
 0x3a9   : > { %2931 = vmatprep.subr.bf16.mxu1 %v6132_v28  ;;  %v6202_v28 = vld [vmem:[%s8459_s11 + $0x200] ss:$28 sps:$4 sm:$0xff]  }
 0x3ac   : > { %2932 = vmatpush1.bf16.msra.mxu1 %v6130_v29  ;;  %v6207_v29 = vld [vmem:[%s8459_s11 + $0x234] ss:$28 sps:$4 sm:$0xff]  }
 0x3ad   : > { %2933 = vmatprep.subr.bf16.mxu1 %v6138_v36  ;;  %v6205_v36 = vld [vmem:[%s8459_s11 + $0x230] ss:$28 sps:$4 sm:$0xff]  }
 0x3b0   : > { %2934 = vmatpush1.bf16.msra.mxu1 %v6136_v38  ;;  %v6213_v38 = vld [vmem:[%s8459_s11 + $0x26c] ss:$28 sps:$4 sm:$0xff]  }
 0x3b1   : > { %2935 = vmatprep.subr.bf16.mxu1 %v6144_v40  ;;  %v6211_v40 = vld [vmem:[%s8459_s11 + $0x268] ss:$28 sps:$4 sm:$0xff]  }
 0x3b4   : > { %2936 = vmatpush1.bf16.msra.mxu1 %v6142_v42  ;;  %v6219_v42 = vld [vmem:[%s8459_s11 + $0x2a4] ss:$28 sps:$4 sm:$0xff]  }
 0x3b5   : > { %4507 = vmatprep.subr.bf16.mxu1 %v6150_v44  ;;  %v6217_v44 = vld [vmem:[%s8459_s11 + $0x2a0] ss:$28 sps:$4 sm:$0xff]  }
 0x46a   : > { %v2654_v46 = vpop.f32.mrb[12].mxu1 }
 0x46b   : > { %v2655_v47 = vadd.f32 %v5215_v45, %v2654_v46  ;;  %v5633_v48 = vpop.f32.mrb[13].mxu1  ;;  %v6225_v46 = vld [vmem:[%s8459_s11 + $0x2dc] ss:$28 sps:$4 sm:$0xff]  }
 0x46c   : > { %v2657_v49 = vpop.f32.mrb[14].mxu1  ;;  %v6223_v48 = vld [vmem:[%s8459_s11 + $0x2d8] ss:$28 sps:$4 sm:$0xff]  }
 0x46d   : > { %v2658_v50 = vadd.f32 %v5215_v45, %v2657_v49  ;;  %v5634_v51 = vpop.f32.mrb[15].mxu1  ;;  %v2661_v52 = vmax.f32 %v2655_v47, 0.0  ;;  %v6220_v45 = vld [vmem:[%s8459_s11 + $0x2a8] ss:$28 sps:$4 sm:$0xff]   ;;  %v6226_v49 = vld [vmem:[%s8459_s11 + $0x2e0] ss:$28 sps:$4 sm:$0xff]  }
 0x46e   : > { %v6228_v47 = vld [vmem:[%s8459_s11 + $0x2e4] ss:$28 sps:$4 sm:$0xff]   ;;  %v6234_v51 = vld [vmem:[%s8459_s11 + $0x31c] ss:$28 sps:$4 sm:$0xff]  }
 0x46f   : > { %v2662_v53 = vmax.f32 %v2658_v50, 0.0  ;;  %v6231_v50 = vld [vmem:[%s8459_s11 + $0x314] ss:$28 sps:$4 sm:$0xff]  }
 0x471   : > { %v2663_v56 = vpack.c.bf16 %v2662_v53, %v2661_v52  ;;  %v6229_v52 = vld [vmem:[%s8459_s11 + $0x310] ss:$28 sps:$4 sm:$0xff]   ;;  %v6232_v53 = vld [vmem:[%s8459_s11 + $0x318] ss:$28 sps:$4 sm:$0xff]  }
 0x473   : > { %2911 = vmatmul.mubr.bf16.vlgmr.msra.gmra.mrb[8].mxu0 %v2663_v56  ;;  %2954 = vmatmul.mubr.bf16.vlgmr.msra.gmra.mrb[16].mxu1 %v2663_v56  ;;  %v6235_v56 = vld [vmem:[%s8459_s11 + $0x348] ss:$28 sps:$4 sm:$0xff]  }
 0x474   : > { %4422 = vmatpush1.bf16.msra.mxu0 %v6145_v54  ;;  %4508 = vmatpush1.bf16.msra.mxu1 %v6148_v55  ;;  %v6237_v54 = vld [vmem:[%s8459_s11 + $0x34c] ss:$28 sps:$4 sm:$0xff]   ;;  %v6240_v55 = vld [vmem:[%s8459_s11 + $0x354] ss:$28 sps:$4 sm:$0xff]  }
 0x475   : > { %4423 = vmatprep.subr.bf16.mxu0 %v6153_v57  ;;  %4509 = vmatprep.subr.bf16.mxu1 %v6156_v58  ;;  %v6238_v57 = vld [vmem:[%s8459_s11 + $0x350] ss:$28 sps:$4 sm:$0xff]   ;;  %v6243_v58 = vld [vmem:[%s8459_s11 + $0x384] ss:$28 sps:$4 sm:$0xff]  }
 0x478   : > { %4424 = vmatpush1.bf16.msra.mxu0 %v6151_v59  ;;  %4510 = vmatpush1.bf16.msra.mxu1 %v6154_v60  ;;  %v6246_v59 = vld [vmem:[%s8459_s11 + $0x38c] ss:$28 sps:$4 sm:$0xff]   ;;  %v2696_v60 = vld [vmem:[%s8458_s10] sm:$0xf] }
 0x479   : > { %4425 = vmatprep.subr.bf16.mxu0 %v6159_v61  ;;  %4511 = vmatprep.subr.bf16.mxu1 %v6162_v62  ;;  %v2701_v61 = vrot.slane %v2696_v60, %v7380_v31  ;;  %v2709_v62 = vrot.slane %v2696_v60, %v7383_v32 }
 0x47c   : > { %4426 = vmatpush1.bf16.msra.mxu0 %v6157_v63  ;;  %4512 = vmatpush1.bf16.msra.mxu1 %v6160_v0  ;;  %v2705_v63 = vrot.slane %v2696_v60, %v7389_v34  ;;  %v2713_v0 = vrot.slane %v2696_v60, %v7392_v35  ;;  %v6285_v60 = vld [vmem:[%s8459_s11 + $0x50c] ss:$28 sps:$4 sm:$0xff]  }
 0x47d   : > { %4427 = vmatprep.subr.bf16.mxu0 %v6165_v1  ;;  %4513 = vmatprep.subr.bf16.mxu1 %v6168_v2 }
 0x480   : > { %4428 = vmatpush1.bf16.msra.mxu0 %v6163_v3  ;;  %4514 = vmatpush1.bf16.msra.mxu1 %v6166_v4 }
 0x481   : > { %4429 = vmatprep.subr.bf16.mxu0 %v6171_v5  ;;  %4515 = vmatprep.subr.bf16.mxu1 %v6174_v6 }
 0x484   : > { %4430 = vmatpush1.bf16.msra.mxu0 %v6169_v7  ;;  %4516 = vmatpush1.bf16.msra.mxu1 %v6172_v8 }
 0x485   : > { %4431 = vmatprep.subr.bf16.mxu0 %v6177_v9  ;;  %4517 = vmatprep.subr.bf16.mxu1 %v6180_v10 }
 0x488   : > { %4432 = vmatpush1.bf16.msra.mxu0 %v6175_v12  ;;  %4518 = vmatpush1.bf16.msra.mxu1 %v6178_v13 }
 0x489   : > { %4433 = vmatprep.subr.bf16.mxu0 %v6183_v14  ;;  %4519 = vmatprep.subr.bf16.mxu1 %v6186_v15 }
 0x48c   : > { %4434 = vmatpush1.bf16.msra.mxu0 %v6181_v16  ;;  %4520 = vmatpush1.bf16.msra.mxu1 %v6184_v17 }
 0x48d   : > { %4435 = vmatprep.subr.bf16.mxu0 %v6189_v18  ;;  %4521 = vmatprep.subr.bf16.mxu1 %v6192_v19 }
 0x490   : > { %4436 = vmatpush1.bf16.msra.mxu0 %v6187_v20  ;;  %4522 = vmatpush1.bf16.msra.mxu1 %v6190_v21 }
 0x491   : > { %4437 = vmatprep.subr.bf16.mxu0 %v6195_v22  ;;  %4523 = vmatprep.subr.bf16.mxu1 %v6198_v23 }
 0x494   : > { %4438 = vmatpush1.bf16.msra.mxu0 %v6193_v24  ;;  %4524 = vmatpush1.bf16.msra.mxu1 %v6196_v25 }
 0x495   : > { %4439 = vmatprep.subr.bf16.mxu0 %v6201_v11  ;;  %4525 = vmatprep.subr.bf16.mxu1 %v6204_v26 }
 0x498   : > { %4440 = vmatpush1.bf16.msra.mxu0 %v6199_v27  ;;  %4526 = vmatpush1.bf16.msra.mxu1 %v6202_v28 }
 0x499   : > { %4441 = vmatprep.subr.bf16.mxu0 %v6207_v29  ;;  %4527 = vmatprep.subr.bf16.mxu1 %v6210_v33  ;;  %v6241_v29 = vld [vmem:[%s8459_s11 + $0x380] ss:$28 sps:$4 sm:$0xff]   ;;  %v6244_v33 = vld [vmem:[%s8459_s11 + $0x388] ss:$28 sps:$4 sm:$0xff]  }
 0x49c   : > { %4442 = vmatpush1.bf16.msra.mxu0 %v6205_v36  ;;  %4528 = vmatpush1.bf16.msra.mxu1 %v6208_v37  ;;  %v6249_v36 = vld [vmem:[%s8459_s11 + $0x3bc] ss:$28 sps:$4 sm:$0xff]   ;;  %v6252_v37 = vld [vmem:[%s8459_s11 + $0x3c4] ss:$28 sps:$4 sm:$0xff]  }
 0x49d   : > { %4443 = vmatprep.subr.bf16.mxu0 %v6213_v38  ;;  %4529 = vmatprep.subr.bf16.mxu1 %v6216_v39  ;;  %v6247_v38 = vld [vmem:[%s8459_s11 + $0x3b8] ss:$28 sps:$4 sm:$0xff]   ;;  %v6250_v39 = vld [vmem:[%s8459_s11 + $0x3c0] ss:$28 sps:$4 sm:$0xff]  }
 0x4a0   : > { %4444 = vmatpush1.bf16.msra.mxu0 %v6211_v40  ;;  %4530 = vmatpush1.bf16.msra.mxu1 %v6214_v41  ;;  %v6255_v40 = vld [vmem:[%s8459_s11 + $0x3f4] ss:$28 sps:$4 sm:$0xff]   ;;  %v6258_v41 = vld [vmem:[%s8459_s11 + $0x3fc] ss:$28 sps:$4 sm:$0xff]  }
 0x4a1   : > { %4445 = vmatprep.subr.bf16.mxu0 %v6219_v42  ;;  %4531 = vmatprep.subr.bf16.mxu1 %v6222_v43  ;;  %v6253_v42 = vld [vmem:[%s8459_s11 + $0x3f0] ss:$28 sps:$4 sm:$0xff]   ;;  %v6256_v43 = vld [vmem:[%s8459_s11 + $0x3f8] ss:$28 sps:$4 sm:$0xff]  }
 0x4a4   : > { %4446 = vmatpush1.bf16.msra.mxu0 %v6217_v44  ;;  %4532 = vmatpush1.bf16.msra.mxu1 %v6220_v45  ;;  %v6261_v44 = vld [vmem:[%s8459_s11 + $0x42c] ss:$28 sps:$4 sm:$0xff]   ;;  %v6264_v45 = vld [vmem:[%s8459_s11 + $0x434] ss:$28 sps:$4 sm:$0xff]  }
 0x4a5   : > { %4447 = vmatprep.subr.bf16.mxu0 %v6225_v46  ;;  %4533 = vmatprep.subr.bf16.mxu1 %v6228_v47  ;;  %v6259_v46 = vld [vmem:[%s8459_s11 + $0x428] ss:$28 sps:$4 sm:$0xff]   ;;  %v6262_v47 = vld [vmem:[%s8459_s11 + $0x430] ss:$28 sps:$4 sm:$0xff]  }
 0x4a8   : > { %4448 = vmatpush1.bf16.msra.mxu0 %v6223_v48  ;;  %4534 = vmatpush1.bf16.msra.mxu1 %v6226_v49  ;;  %v6267_v48 = vld [vmem:[%s8459_s11 + $0x464] ss:$28 sps:$4 sm:$0xff]   ;;  %v6270_v49 = vld [vmem:[%s8459_s11 + $0x46c] ss:$28 sps:$4 sm:$0xff]  }
 0x4a9   : > { %4449 = vmatprep.subr.bf16.mxu0 %v6231_v50  ;;  %4535 = vmatprep.subr.bf16.mxu1 %v6234_v51  ;;  %v6265_v50 = vld [vmem:[%s8459_s11 + $0x460] ss:$28 sps:$4 sm:$0xff]   ;;  %v6268_v51 = vld [vmem:[%s8459_s11 + $0x468] ss:$28 sps:$4 sm:$0xff]  }
 0x4ac   : > { %4450 = vmatpush1.bf16.msra.mxu0 %v6229_v52  ;;  %4536 = vmatpush1.bf16.msra.mxu1 %v6232_v53  ;;  %v6273_v52 = vld [vmem:[%s8459_s11 + $0x49c] ss:$28 sps:$4 sm:$0xff]   ;;  %v6276_v53 = vld [vmem:[%s8459_s11 + $0x4a4] ss:$28 sps:$4 sm:$0xff]  }
 0x4ad   : > { %4451 = vmatprep.subr.bf16.mxu0 %v6237_v54  ;;  %4537 = vmatprep.subr.bf16.mxu1 %v6240_v55  ;;  %v6271_v54 = vld [vmem:[%s8459_s11 + $0x498] ss:$28 sps:$4 sm:$0xff]   ;;  %v6274_v55 = vld [vmem:[%s8459_s11 + $0x4a0] ss:$28 sps:$4 sm:$0xff]  }
 0x4b0   : > { %4452 = vmatpush1.bf16.msra.mxu0 %v6235_v56  ;;  %4538 = vmatpush1.bf16.msra.mxu1 %v6238_v57  ;;  %v6279_v56 = vld [vmem:[%s8459_s11 + $0x4d4] ss:$28 sps:$4 sm:$0xff]   ;;  %v6282_v57 = vld [vmem:[%s8459_s11 + $0x4dc] ss:$28 sps:$4 sm:$0xff]  }
 0x4b1   : > { %4464 = vmatprep.subr.bf16.mxu0 %v6243_v58  ;;  %4550 = vmatprep.subr.bf16.mxu1 %v6246_v59  ;;  %v6277_v58 = vld [vmem:[%s8459_s11 + $0x4d0] ss:$28 sps:$4 sm:$0xff]   ;;  %v6280_v59 = vld [vmem:[%s8459_s11 + $0x4d8] ss:$28 sps:$4 sm:$0xff]  }
 0x546   : > { %v2912_v1 = vpop.f32.mrb[8].mxu0  ;;  %v2955_v2 = vpop.f32.mrb[16].mxu1 }
 0x547   : > { %v2913_v3 = vadd.f32 %v2912_v1, %v2701_v61  ;;  %v2956_v4 = vadd.f32 %v2955_v2, %v2709_v62  ;;  %v2914_v5 = vpop.f32.mrb[9].mxu0  ;;  %v2957_v6 = vpop.f32.mrb[17].mxu1  ;;  %v6294_v1 = vld [vmem:[%s8459_s11 + $0x54c] ss:$28 sps:$4 sm:$0xff]   ;;  %v6289_v2 = vld [vmem:[%s8459_s11 + $0x540] ss:$28 sps:$4 sm:$0xff]  }
 0x548   : > { %v2915_v7 = vadd.f32 %v2914_v5, %v2705_v63  ;;  %v2958_v8 = vadd.f32 %v2957_v6, %v2713_v0  ;;  %v2916_v9 = vpop.f32.mrb[10].mxu0  ;;  %v2959_v10 = vpop.f32.mrb[18].mxu1  ;;  %v6300_v5 = vld [vmem:[%s8459_s11 + $0x584] ss:$28 sps:$4 sm:$0xff]   ;;  %v6295_v6 = vld [vmem:[%s8459_s11 + $0x578] ss:$28 sps:$4 sm:$0xff]  }
 0x549   : > { %v2917_v12 = vadd.f32 %v2916_v9, %v2701_v61  ;;  %v2960_v13 = vadd.f32 %v2959_v10, %v2709_v62  ;;  %v2918_v14 = vpop.f32.mrb[11].mxu0  ;;  %v2961_v15 = vpop.f32.mrb[19].mxu1  ;;  %v2964_v18 = vmax.f32 %v2913_v3, 0.0  ;;  %v2966_v19 = vmax.f32 %v2956_v4, 0.0  ;;  %v6288_v61 = vld [vmem:[%s8459_s11 + $0x514] ss:$28 sps:$4 sm:$0xff]  }
 0x54a   : > { %v2919_v16 = vadd.f32 %v2918_v14, %v2705_v63  ;;  %v2962_v17 = vadd.f32 %v2961_v15, %v2713_v0  ;;  %v2965_v22 = vmax.f32 %v2915_v7, 0.0  ;;  %v2967_v23 = vmax.f32 %v2958_v8, 0.0  ;;  %v6283_v62 = vld [vmem:[%s8459_s11 + $0x508] ss:$28 sps:$4 sm:$0xff]   ;;  %v6286_v63 = vld [vmem:[%s8459_s11 + $0x510] ss:$28 sps:$4 sm:$0xff]  }
 0x54b   : > { %v2968_v20 = vmax.f32 %v2917_v12, 0.0  ;;  %v2970_v21 = vmax.f32 %v2960_v13, 0.0  ;;  %v6291_v0 = vld [vmem:[%s8459_s11 + $0x544] ss:$28 sps:$4 sm:$0xff]   ;;  %v6297_v4 = vld [vmem:[%s8459_s11 + $0x57c] ss:$28 sps:$4 sm:$0xff]  }
 0x54c   : > { %v2969_v24 = vmax.f32 %v2919_v16, 0.0  ;;  %v2971_v25 = vmax.f32 %v2962_v17, 0.0  ;;  %v6292_v3 = vld [vmem:[%s8459_s11 + $0x548] ss:$28 sps:$4 sm:$0xff]   ;;  %v6298_v7 = vld [vmem:[%s8459_s11 + $0x580] ss:$28 sps:$4 sm:$0xff]  }
 0x54d   : > { %v7829_v11 = vpack.c.bf16 %v2968_v20, %v2964_v18  ;;  %v7831_v26 = vpack.c.bf16 %v2970_v21, %v2966_v19  ;;  %v6303_v8 = vld [vmem:[%s8459_s11 + $0x5b4] ss:$28 sps:$4 sm:$0xff]   ;;  %v6306_v9 = vld [vmem:[%s8459_s11 + $0x5bc] ss:$28 sps:$4 sm:$0xff]   ;;  %v6309_v13 = vld [vmem:[%s8459_s11 + $0x5ec] ss:$28 sps:$4 sm:$0xff]  }
 0x54e   : > { %v7833_v27 = vpack.c.bf16 %v2969_v24, %v2965_v22  ;;  %v7835_v28 = vpack.c.bf16 %v2971_v25, %v2967_v23  ;;  %v6301_v10 = vld [vmem:[%s8459_s11 + $0x5b0] ss:$28 sps:$4 sm:$0xff]   ;;  %v6304_v12 = vld [vmem:[%s8459_s11 + $0x5b8] ss:$28 sps:$4 sm:$0xff]   ;;  %v6307_v15 = vld [vmem:[%s8459_s11 + $0x5e8] ss:$28 sps:$4 sm:$0xff]  }
 0x54f   : > { %v6312_v14 = vld [vmem:[%s8459_s11 + $0x5f4] ss:$28 sps:$4 sm:$0xff]   ;;  %v6315_v17 = vld [vmem:[%s8459_s11 + $0x624] ss:$28 sps:$4 sm:$0xff]   ;;  %v6318_v18 = vld [vmem:[%s8459_s11 + $0x62c] ss:$28 sps:$4 sm:$0xff]  }
 0x550   : > { %4453 = vmatprep.mubr.bf16.mxu0 %v7833_v27  ;;  %4539 = vmatprep.mubr.bf16.mxu1 %v7833_v27  ;;  %v6310_v16 = vld [vmem:[%s8459_s11 + $0x5f0] ss:$28 sps:$4 sm:$0xff]   ;;  %v6313_v19 = vld [vmem:[%s8459_s11 + $0x620] ss:$28 sps:$4 sm:$0xff]   ;;  %v6316_v20 = vld [vmem:[%s8459_s11 + $0x628] ss:$28 sps:$4 sm:$0xff]  }
 0x551   : > { %4454 = vmatmul.mubr.bf16.vlgmr.msra.gmra.mrb[12].mxu0 %v7829_v11  ;;  %4540 = vmatmul.mubr.bf16.vlgmr.msra.gmra.mrb[20].mxu1 %v7829_v11  ;;  %v6321_v21 = vld [vmem:[%s8459_s11 + $0x65c] ss:$28 sps:$4 sm:$0xff]   ;;  %v6324_v22 = vld [vmem:[%s8459_s11 + $0x664] ss:$28 sps:$4 sm:$0xff]   ;;  %v6327_v25 = vld [vmem:[%s8459_s11 + $0x694] ss:$28 sps:$4 sm:$0xff]  }
 0x552   : > { %4465 = vmatpush1.bf16.msra.mxu0 %v6241_v29  ;;  %4551 = vmatpush1.bf16.msra.mxu1 %v6244_v33  ;;  %v6319_v23 = vld [vmem:[%s8459_s11 + $0x658] ss:$28 sps:$4 sm:$0xff]   ;;  %v6322_v24 = vld [vmem:[%s8459_s11 + $0x660] ss:$28 sps:$4 sm:$0xff]   ;;  %v6325_v33 = vld [vmem:[%s8459_s11 + $0x690] ss:$28 sps:$4 sm:$0xff]  }
 0x553   : > { %4496 = vmatprep.mubr.bf16.mxu0 %v7835_v28  ;;  %4582 = vmatprep.mubr.bf16.mxu1 %v7835_v28  ;;  %v6330_v29 = vld [vmem:[%s8459_s11 + $0x69c] ss:$28 sps:$4 sm:$0xff]  }
 0x554   : > { %4466 = vmatprep.subr.bf16.mxu0 %v6249_v36  ;;  %4552 = vmatprep.subr.bf16.mxu1 %v6252_v37  ;;  %v6328_v36 = vld [vmem:[%s8459_s11 + $0x698] ss:$28 sps:$4 sm:$0xff]   ;;  %v6333_v37 = vld [vmem:[%s8459_s11 + $0x6cc] ss:$28 sps:$4 sm:$0xff]  }
 0x556   : > { %4467 = vmatpush1.bf16.msra.mxu0 %v6247_v38  ;;  %4553 = vmatpush1.bf16.msra.mxu1 %v6250_v39  ;;  %v6336_v38 = vld [vmem:[%s8459_s11 + $0x6d4] ss:$28 sps:$4 sm:$0xff]   ;;  %v6331_v39 = vld [vmem:[%s8459_s11 + $0x6c8] ss:$28 sps:$4 sm:$0xff]  }
 0x557   : > { %4468 = vmatprep.subr.bf16.mxu0 %v6255_v40  ;;  %4554 = vmatprep.subr.bf16.mxu1 %v6258_v41  ;;  %v6334_v40 = vld [vmem:[%s8459_s11 + $0x6d0] ss:$28 sps:$4 sm:$0xff]  }
 0x558   : > { %v6339_v41 = vld [vmem:[%s8459_s11 + $0x14] ss:$28 sps:$4 sm:$0xff]  }
 0x55a   : > { %4469 = vmatpush1.bf16.msra.mxu0 %v6253_v42  ;;  %4555 = vmatpush1.bf16.msra.mxu1 %v6256_v43  ;;  %v6340_v42 = vld [vmem:[%s8459_s11 + $0x1d8] ss:$28 sps:$4 sm:$0xff]   ;;  %v6337_v43 = vld [vmem:[%s8459_s11 + $0x10] ss:$28 sps:$4 sm:$0xff]  }
 0x55b   : > { %4470 = vmatprep.subr.bf16.mxu0 %v6261_v44  ;;  %4556 = vmatprep.subr.bf16.mxu1 %v6264_v45  ;;  %v6341_v44 = vld [vmem:[%s8459_s11 + $0x18] ss:$28 sps:$4 sm:$0xff]   ;;  %v6344_v45 = vld [vmem:[%s8459_s11 + $0x4c] ss:$28 sps:$4 sm:$0xff]  }
 0x55e   : > { %4471 = vmatpush1.bf16.msra.mxu0 %v6259_v46  ;;  %4557 = vmatpush1.bf16.msra.mxu1 %v6262_v47  ;;  %v6345_v46 = vld [vmem:[%s8459_s11 + $0x210] ss:$28 sps:$4 sm:$0xff]   ;;  %v6342_v47 = vld [vmem:[%s8459_s11 + $0x48] ss:$28 sps:$4 sm:$0xff]  }
 0x55f   : > { %4472 = vmatprep.subr.bf16.mxu0 %v6267_v48  ;;  %4558 = vmatprep.subr.bf16.mxu1 %v6270_v49  ;;  %v6346_v48 = vld [vmem:[%s8459_s11 + $0x50] ss:$28 sps:$4 sm:$0xff]   ;;  %v6349_v49 = vld [vmem:[%s8459_s11 + $0x84] ss:$28 sps:$4 sm:$0xff]  }
 0x562   : > { %4473 = vmatpush1.bf16.msra.mxu0 %v6265_v50  ;;  %4559 = vmatpush1.bf16.msra.mxu1 %v6268_v51  ;;  %v6350_v50 = vld [vmem:[%s8459_s11 + $0x248] ss:$28 sps:$4 sm:$0xff]   ;;  %v6347_v51 = vld [vmem:[%s8459_s11 + $0x80] ss:$28 sps:$4 sm:$0xff]  }
 0x563   : > { %4474 = vmatprep.subr.bf16.mxu0 %v6273_v52  ;;  %4560 = vmatprep.subr.bf16.mxu1 %v6276_v53  ;;  %v6354_v52 = vld [vmem:[%s8459_s11 + $0xbc] ss:$28 sps:$4 sm:$0xff]  }
 0x564   : > { %v6355_v53 = vld [vmem:[%s8459_s11 + $0x280] ss:$28 sps:$4 sm:$0xff]  }
 0x566   : > { %4475 = vmatpush1.bf16.msra.mxu0 %v6271_v54  ;;  %4561 = vmatpush1.bf16.msra.mxu1 %v6274_v55  ;;  %v6352_v54 = vld [vmem:[%s8459_s11 + $0xb8] ss:$28 sps:$4 sm:$0xff]   ;;  %v6356_v55 = vld [vmem:[%s8459_s11 + $0xc0] ss:$28 sps:$4 sm:$0xff]  }
 0x567   : > { %4476 = vmatprep.subr.bf16.mxu0 %v6279_v56  ;;  %4562 = vmatprep.subr.bf16.mxu1 %v6282_v57  ;;  %v6359_v56 = vld [vmem:[%s8459_s11 + $0xf4] ss:$28 sps:$4 sm:$0xff]  }
 0x568   : > { %v6360_v57 = vld [vmem:[%s8459_s11 + $0x2b8] ss:$28 sps:$4 sm:$0xff]  }
 0x56a   : > { %4477 = vmatpush1.bf16.msra.mxu0 %v6277_v58  ;;  %4563 = vmatpush1.bf16.msra.mxu1 %v6280_v59  ;;  %v6357_v58 = vld [vmem:[%s8459_s11 + $0xf0] ss:$28 sps:$4 sm:$0xff]   ;;  %v6361_v59 = vld [vmem:[%s8459_s11 + $0xf8] ss:$28 sps:$4 sm:$0xff]  }
 0x56b   : > { %4478 = vmatprep.subr.bf16.mxu0 %v6285_v60  ;;  %4564 = vmatprep.subr.bf16.mxu1 %v6288_v61  ;;  %v6364_v60 = vld [vmem:[%s8459_s11 + $0x12c] ss:$28 sps:$4 sm:$0xff]  }
 0x56c   : > { %v6365_v61 = vld [vmem:[%s8459_s11 + $0x2f0] ss:$28 sps:$4 sm:$0xff]  }
 0x56e   : > { %4479 = vmatpush1.bf16.msra.mxu0 %v6283_v62  ;;  %4565 = vmatpush1.bf16.msra.mxu1 %v6286_v63  ;;  %v6362_v62 = vld [vmem:[%s8459_s11 + $0x128] ss:$28 sps:$4 sm:$0xff]   ;;  %v6366_v63 = vld [vmem:[%s8459_s11 + $0x130] ss:$28 sps:$4 sm:$0xff]  }
 0x56f   : > { %4480 = vmatprep.subr.bf16.mxu0 %v6291_v0  ;;  %4566 = vmatprep.subr.bf16.mxu1 %v6294_v1  ;;  %v6369_v0 = vld [vmem:[%s8459_s11 + $0x164] ss:$28 sps:$4 sm:$0xff]  }
 0x570   : > { %v6370_v1 = vld [vmem:[%s8459_s11 + $0x328] ss:$28 sps:$4 sm:$0xff]  }
 0x572   : > { %4481 = vmatpush1.bf16.msra.mxu0 %v6289_v2  ;;  %4567 = vmatpush1.bf16.msra.mxu1 %v6292_v3  ;;  %v6367_v2 = vld [vmem:[%s8459_s11 + $0x160] ss:$28 sps:$4 sm:$0xff]   ;;  %v6371_v3 = vld [vmem:[%s8459_s11 + $0x168] ss:$28 sps:$4 sm:$0xff]  }
 0x573   : > { %4482 = vmatprep.subr.bf16.mxu0 %v6297_v4  ;;  %4568 = vmatprep.subr.bf16.mxu1 %v6300_v5  ;;  %v6374_v4 = vld [vmem:[%s8459_s11 + $0x19c] ss:$28 sps:$4 sm:$0xff]  }
 0x574   : > { %v6375_v5 = vld [vmem:[%s8459_s11 + $0x360] ss:$28 sps:$4 sm:$0xff]  }
 0x576   : > { %4483 = vmatpush1.bf16.msra.mxu0 %v6295_v6  ;;  %4569 = vmatpush1.bf16.msra.mxu1 %v6298_v7  ;;  %v6372_v6 = vld [vmem:[%s8459_s11 + $0x198] ss:$28 sps:$4 sm:$0xff]   ;;  %v6376_v7 = vld [vmem:[%s8459_s11 + $0x1a0] ss:$28 sps:$4 sm:$0xff]  }
 0x577   : > { %4484 = vmatprep.subr.bf16.mxu0 %v6303_v8  ;;  %4570 = vmatprep.subr.bf16.mxu1 %v6306_v9  ;;  %v6379_v8 = vld [vmem:[%s8459_s11 + $0x1d4] ss:$28 sps:$4 sm:$0xff]  }
 0x578   : > { %v6380_v9 = vld [vmem:[%s8459_s11 + $0x558] ss:$28 sps:$4 sm:$0xff]  }
 0x57a   : > { %4485 = vmatpush1.bf16.msra.mxu0 %v6301_v10  ;;  %4571 = vmatpush1.bf16.msra.mxu1 %v6304_v12  ;;  %v6377_v10 = vld [vmem:[%s8459_s11 + $0x1d0] ss:$28 sps:$4 sm:$0xff]   ;;  %v6381_v12 = vld [vmem:[%s8459_s11 + $0x398] ss:$28 sps:$4 sm:$0xff]  }
 0x57b   : > { %4486 = vmatprep.subr.bf16.mxu0 %v6309_v13  ;;  %4572 = vmatprep.subr.bf16.mxu1 %v6312_v14  ;;  %v6384_v13 = vld [vmem:[%s8459_s11 + $0x20c] ss:$28 sps:$4 sm:$0xff]  }
 0x57c   : > { %v6385_v14 = vld [vmem:[%s8459_s11 + $0x590] ss:$28 sps:$4 sm:$0xff]  }
 0x57e   : > { %4487 = vmatpush1.bf16.msra.mxu0 %v6307_v15  ;;  %4573 = vmatpush1.bf16.msra.mxu1 %v6310_v16  ;;  %v6382_v15 = vld [vmem:[%s8459_s11 + $0x208] ss:$28 sps:$4 sm:$0xff]   ;;  %v6386_v16 = vld [vmem:[%s8459_s11 + $0x3d0] ss:$28 sps:$4 sm:$0xff]  }
 0x57f   : > { %4488 = vmatprep.subr.bf16.mxu0 %v6315_v17  ;;  %4574 = vmatprep.subr.bf16.mxu1 %v6318_v18  ;;  %v6389_v17 = vld [vmem:[%s8459_s11 + $0x244] ss:$28 sps:$4 sm:$0xff]  }
 0x580   : > { %v6390_v18 = vld [vmem:[%s8459_s11 + $0x5c8] ss:$28 sps:$4 sm:$0xff]  }
 0x582   : > { %4489 = vmatpush1.bf16.msra.mxu0 %v6313_v19  ;;  %4575 = vmatpush1.bf16.msra.mxu1 %v6316_v20  ;;  %v6387_v19 = vld [vmem:[%s8459_s11 + $0x240] ss:$28 sps:$4 sm:$0xff]   ;;  %v6391_v20 = vld [vmem:[%s8459_s11 + $0x408] ss:$28 sps:$4 sm:$0xff]  }
 0x583   : > { %4490 = vmatprep.subr.bf16.mxu0 %v6321_v21  ;;  %4576 = vmatprep.subr.bf16.mxu1 %v6324_v22  ;;  %v6394_v21 = vld [vmem:[%s8459_s11 + $0x27c] ss:$28 sps:$4 sm:$0xff]  }
 0x584   : > { %v6395_v22 = vld [vmem:[%s8459_s11 + $0x600] ss:$28 sps:$4 sm:$0xff]  }
 0x586   : > { %4491 = vmatpush1.bf16.msra.mxu0 %v6319_v23  ;;  %4577 = vmatpush1.bf16.msra.mxu1 %v6322_v24  ;;  %v6392_v23 = vld [vmem:[%s8459_s11 + $0x278] ss:$28 sps:$4 sm:$0xff]   ;;  %v6396_v24 = vld [vmem:[%s8459_s11 + $0x440] ss:$28 sps:$4 sm:$0xff]  }
 0x587   : > { %4492 = vmatprep.subr.bf16.mxu0 %v6327_v25  ;;  %4578 = vmatprep.subr.bf16.mxu1 %v6330_v29  ;;  %v6399_v25 = vld [vmem:[%s8459_s11 + $0x2b4] ss:$28 sps:$4 sm:$0xff]  }
 0x588   : > { %v6400_v29 = vld [vmem:[%s8459_s11 + $0x638] ss:$28 sps:$4 sm:$0xff]  }
 0x58a   : > { %4493 = vmatpush1.bf16.msra.mxu0 %v6325_v33  ;;  %4579 = vmatpush1.bf16.msra.mxu1 %v6328_v36  ;;  %v6397_v33 = vld [vmem:[%s8459_s11 + $0x2b0] ss:$28 sps:$4 sm:$0xff]   ;;  %v6401_v36 = vld [vmem:[%s8459_s11 + $0x478] ss:$28 sps:$4 sm:$0xff]  }
 0x58b   : > { %4494 = vmatprep.subr.bf16.mxu0 %v6333_v37  ;;  %4580 = vmatprep.subr.bf16.mxu1 %v6336_v38  ;;  %v6404_v37 = vld [vmem:[%s8459_s11 + $0x2ec] ss:$28 sps:$4 sm:$0xff]  }
 0x58c   : > { %v6405_v38 = vld [vmem:[%s8459_s11 + $0x670] ss:$28 sps:$4 sm:$0xff]  }
 0x58e   : > { %4495 = vmatpush1.bf16.msra.mxu0 %v6331_v39  ;;  %4581 = vmatpush1.bf16.msra.mxu1 %v6334_v40  ;;  %v6402_v39 = vld [vmem:[%s8459_s11 + $0x2e8] ss:$28 sps:$4 sm:$0xff]   ;;  %v6406_v40 = vld [vmem:[%s8459_s11 + $0x4b0] ss:$28 sps:$4 sm:$0xff]  }
 0x58f   : > { %4593 = vmatprep.subr.bf16.mxu0 %v6339_v41  ;;  %5551 = vmatprep.subr.bf16.mxu1 %v6340_v42  ;;  %v6409_v41 = vld [vmem:[%s8459_s11 + $0x324] ss:$28 sps:$4 sm:$0xff]  }
 0x590   : > { %v6410_v42 = vld [vmem:[%s8459_s11 + $0x6a8] ss:$28 sps:$4 sm:$0xff]  }
 0x591   : > { %4497 = vmatmul.mubr.bf16.vlgmr.msra.gmra.mrb[12].mxu0 %v7831_v26  ;;  %4583 = vmatmul.mubr.bf16.vlgmr.msra.gmra.mrb[20].mxu1 %v7831_v26 }
 0x592   : > { %4594 = vmatpush1.bf16.msra.mxu0 %v6337_v43  ;;  %4625 = vmatprep.mubr.bf16.mxu0 %v7833_v27  ;;  %v6407_v43 = vld [vmem:[%s8459_s11 + $0x320] ss:$28 sps:$4 sm:$0xff]  }
 0x593   : > { %5552 = vmatpush3.bf16.msra.mxu1 %v6341_v44  ;;  %4711 = vmatprep.mubr.bf16.mxu1 %v7833_v27  ;;  %v6351_v27 = vld [vmem:[%s8459_s11 + $0x88] ss:$28 sps:$4 sm:$0xff]  }
 0x594   : > { %4595 = vmatprep.subr.bf16.mxu0 %v6344_v45  ;;  %5553 = vmatprep.subr.bf16.mxu1 %v6345_v46  ;;  %v6411_v44 = vld [vmem:[%s8459_s11 + $0x4e8] ss:$28 sps:$4 sm:$0xff]   ;;  %v6414_v45 = vld [vmem:[%s8459_s11 + $0x35c] ss:$28 sps:$4 sm:$0xff]  }
 0x595   : > { %v6415_v46 = vld [vmem:[%s8459_s11 + $0x6e0] ss:$28 sps:$4 sm:$0xff]  }
 0x596   : > { %4596 = vmatpush1.bf16.msra.mxu0 %v6342_v47  ;;  %v6412_v47 = vld [vmem:[%s8459_s11 + $0x358] ss:$28 sps:$4 sm:$0xff]  }
 0x597   : > { %5554 = vmatpush3.bf16.msra.mxu1 %v6346_v48  ;;  %4597 = vmatprep.subr.bf16.mxu0 %v6349_v49  ;;  %v6416_v48 = vld [vmem:[%s8459_s11 + $0x520] ss:$28 sps:$4 sm:$0xff]   ;;  %v6419_v49 = vld [vmem:[%s8459_s11 + $0x394] ss:$28 sps:$4 sm:$0xff]  }
 0x598   : > { %5555 = vmatprep.subr.bf16.mxu1 %v6350_v50  ;;  %v6417_v50 = vld [vmem:[%s8459_s11 + $0x390] ss:$28 sps:$4 sm:$0xff]  }
 0x59a   : > { %4598 = vmatpush1.bf16.msra.mxu0 %v6347_v51  ;;  %v6422_v51 = vld [vmem:[%s8459_s11 + $0x3cc] ss:$28 sps:$4 sm:$0xff]  }
 0x59b   : > { %5556 = vmatpush3.bf16.msra.mxu1 %v6351_v27  ;;  %4599 = vmatprep.subr.bf16.mxu0 %v6354_v52  ;;  %v6420_v27 = vld [vmem:[%s8459_s11 + $0x3c8] ss:$28 sps:$4 sm:$0xff]  }
 0x59c   : > { %5557 = vmatprep.subr.bf16.mxu1 %v6355_v53  ;;  %v6425_v52 = vld [vmem:[%s8459_s11 + $0x404] ss:$28 sps:$4 sm:$0xff]  }
 0x59d   : > { %v6423_v53 = vld [vmem:[%s8459_s11 + $0x400] ss:$28 sps:$4 sm:$0xff]  }
 0x59e   : > { %4600 = vmatpush1.bf16.msra.mxu0 %v6352_v54  ;;  %v6431_v54 = vld [vmem:[%s8459_s11 + $0x474] ss:$28 sps:$4 sm:$0xff]  }
 0x59f   : > { %5558 = vmatpush3.bf16.msra.mxu1 %v6356_v55  ;;  %4601 = vmatprep.subr.bf16.mxu0 %v6359_v56  ;;  %v6429_v55 = vld [vmem:[%s8459_s11 + $0x470] ss:$28 sps:$4 sm:$0xff]  }
 0x5a0   : > { %5559 = vmatprep.subr.bf16.mxu1 %v6360_v57  ;;  %v6434_v56 = vld [vmem:[%s8459_s11 + $0x4ac] ss:$28 sps:$4 sm:$0xff]  }
 0x5a1   : > { %v6432_v57 = vld [vmem:[%s8459_s11 + $0x4a8] ss:$28 sps:$4 sm:$0xff]  }
 0x5a2   : > { %4602 = vmatpush1.bf16.msra.mxu0 %v6357_v58  ;;  %v6437_v58 = vld [vmem:[%s8459_s11 + $0x4e4] ss:$28 sps:$4 sm:$0xff]  }
 0x5a3   : > { %5560 = vmatpush3.bf16.msra.mxu1 %v6361_v59  ;;  %4603 = vmatprep.subr.bf16.mxu0 %v6364_v60  ;;  %v6435_v59 = vld [vmem:[%s8459_s11 + $0x4e0] ss:$28 sps:$4 sm:$0xff]  }
 0x5a4   : > { %5561 = vmatprep.subr.bf16.mxu1 %v6365_v61  ;;  %v6440_v60 = vld [vmem:[%s8459_s11 + $0x51c] ss:$28 sps:$4 sm:$0xff]  }
 0x5a5   : > { %v6438_v61 = vld [vmem:[%s8459_s11 + $0x518] ss:$28 sps:$4 sm:$0xff]  }
 0x5a6   : > { %4604 = vmatpush1.bf16.msra.mxu0 %v6362_v62  ;;  %v6443_v62 = vld [vmem:[%s8459_s11 + $0x554] ss:$28 sps:$4 sm:$0xff]  }
 0x5a7   : > { %5562 = vmatpush3.bf16.msra.mxu1 %v6366_v63  ;;  %4605 = vmatprep.subr.bf16.mxu0 %v6369_v0  ;;  %v6441_v63 = vld [vmem:[%s8459_s11 + $0x550] ss:$28 sps:$4 sm:$0xff]  }
 0x5a8   : > { %5563 = vmatprep.subr.bf16.mxu1 %v6370_v1  ;;  %v6446_v0 = vld [vmem:[%s8459_s11 + $0x58c] ss:$28 sps:$4 sm:$0xff]  }
 0x5a9   : > { %v6444_v1 = vld [vmem:[%s8459_s11 + $0x588] ss:$28 sps:$4 sm:$0xff]  }
 0x5aa   : > { %4606 = vmatpush1.bf16.msra.mxu0 %v6367_v2  ;;  %v6449_v2 = vld [vmem:[%s8459_s11 + $0x5c4] ss:$28 sps:$4 sm:$0xff]  }
 0x5ab   : > { %5564 = vmatpush3.bf16.msra.mxu1 %v6371_v3  ;;  %4607 = vmatprep.subr.bf16.mxu0 %v6374_v4  ;;  %v6447_v3 = vld [vmem:[%s8459_s11 + $0x5c0] ss:$28 sps:$4 sm:$0xff]  }
 0x5ac   : > { %5565 = vmatprep.subr.bf16.mxu1 %v6375_v5  ;;  %v6452_v4 = vld [vmem:[%s8459_s11 + $0x5fc] ss:$28 sps:$4 sm:$0xff]  }
 0x5ad   : > { %v6450_v5 = vld [vmem:[%s8459_s11 + $0x5f8] ss:$28 sps:$4 sm:$0xff]  }
 0x5ae   : > { %4608 = vmatpush1.bf16.msra.mxu0 %v6372_v6  ;;  %v6455_v6 = vld [vmem:[%s8459_s11 + $0x634] ss:$28 sps:$4 sm:$0xff]  }
 0x5af   : > { %5566 = vmatpush3.bf16.msra.mxu1 %v6376_v7  ;;  %4609 = vmatprep.subr.bf16.mxu0 %v6379_v8  ;;  %v6453_v7 = vld [vmem:[%s8459_s11 + $0x630] ss:$28 sps:$4 sm:$0xff]  }
 0x5b0   : > { %5573 = vmatprep.subr.bf16.mxu1 %v6380_v9  ;;  %v6458_v8 = vld [vmem:[%s8459_s11 + $0x66c] ss:$28 sps:$4 sm:$0xff]  }
 0x5b1   : > { %v6456_v9 = vld [vmem:[%s8459_s11 + $0x668] ss:$28 sps:$4 sm:$0xff]  }
 0x5b2   : > { %4712 = vmatmul.mubr.bf16.vlgmr.msra.gmra.mrb[24].mxu1 %v7829_v11  ;;  %4610 = vmatpush1.bf16.msra.mxu0 %v6377_v10  ;;  %v6461_v10 = vld [vmem:[%s8459_s11 + $0x6a4] ss:$28 sps:$4 sm:$0xff]  }
 0x5b3   : > { %5574 = vmatpush3.bf16.msra.mxu1 %v6381_v12  ;;  %4752 = vmatprep.mubr.bf16.mxu1 %v7835_v28  ;;  %v6459_v12 = vld [vmem:[%s8459_s11 + $0x6a0] ss:$28 sps:$4 sm:$0xff]  }
 0x5b4   : > { %4611 = vmatprep.subr.bf16.mxu0 %v6384_v13  ;;  %5575 = vmatprep.subr.bf16.mxu1 %v6385_v14  ;;  %v6464_v13 = vld [vmem:[%s8459_s11 + $0x6dc] ss:$28 sps:$4 sm:$0xff]  }
 0x5b5   : > { %v6462_v14 = vld [vmem:[%s8459_s11 + $0x6d8] ss:$28 sps:$4 sm:$0xff]  }
 0x5b6   : > { %4612 = vmatpush1.bf16.msra.mxu0 %v6382_v15  ;;  %v8330_v15 = vld [vmem:[%s8460_s12] sm:$0x7f] }
 0x5b7   : > { %5576 = vmatpush3.bf16.msra.mxu1 %v6386_v16  ;;  %4613 = vmatprep.subr.bf16.mxu0 %v6389_v17  ;;  %v3237_v16 = vrot.slane %v8330_v15, %v7380_v31  ;;  %v3245_v17 = vrot.slane %v8330_v15, %v7383_v32 }
 0x5b8   : > { %5577 = vmatprep.subr.bf16.mxu1 %v6390_v18  ;;  %v3241_v18 = vrot.slane %v8330_v15, %v7389_v34 }
 0x5ba   : > { %4614 = vmatpush1.bf16.msra.mxu0 %v6387_v19  ;;  %v3249_v19 = vrot.slane %v8330_v15, %v7392_v35 }
 0x5bb   : > { %5578 = vmatpush3.bf16.msra.mxu1 %v6391_v20  ;;  %4615 = vmatprep.subr.bf16.mxu0 %v6394_v21 }
 0x5bc   : > { %5579 = vmatprep.subr.bf16.mxu1 %v6395_v22 }
 0x5be   : > { %4616 = vmatpush1.bf16.msra.mxu0 %v6392_v23 }
 0x5bf   : > { %5580 = vmatpush3.bf16.msra.mxu1 %v6396_v24  ;;  %4617 = vmatprep.subr.bf16.mxu0 %v6399_v25 }
 0x5c0   : > { %5581 = vmatprep.subr.bf16.mxu1 %v6400_v29 }
 0x5c2   : > { %4618 = vmatpush1.bf16.msra.mxu0 %v6397_v33 }
 0x5c3   : > { %5582 = vmatpush3.bf16.msra.mxu1 %v6401_v36  ;;  %4619 = vmatprep.subr.bf16.mxu0 %v6404_v37 }
 0x5c4   : > { %5583 = vmatprep.subr.bf16.mxu1 %v6405_v38 }
 0x5c6   : > { %4620 = vmatpush1.bf16.msra.mxu0 %v6402_v39 }
 0x5c7   : > { %5584 = vmatpush3.bf16.msra.mxu1 %v6406_v40  ;;  %4621 = vmatprep.subr.bf16.mxu0 %v6409_v41 }
 0x5c8   : > { %5585 = vmatprep.subr.bf16.mxu1 %v6410_v42 }
 0x5ca   : > { %4622 = vmatpush1.bf16.msra.mxu0 %v6407_v43 }
 0x5cb   : > { %5586 = vmatpush3.bf16.msra.mxu1 %v6411_v44  ;;  %4623 = vmatprep.subr.bf16.mxu0 %v6414_v45 }
 0x5cc   : > { %5587 = vmatprep.subr.bf16.mxu1 %v6415_v46 }
 0x5ce   : > { %4624 = vmatpush1.bf16.msra.mxu0 %v6412_v47 }
 0x5cf   : > { %5588 = vmatpush3.bf16.msra.mxu1 %v6416_v48  ;;  %4636 = vmatprep.subr.bf16.mxu0 %v6419_v49 }
 0x5d1   : > { %4626 = vmatmul.mubr.bf16.vlgmr.msra.gmra.mrb[16].mxu0 %v7829_v11  ;;  %v6428_v11 = vld [vmem:[%s8459_s11 + $0x43c] ss:$28 sps:$4 sm:$0xff]  }
 0x5d2   : > { %4753 = vmatmul.mubr.bf16.vlgmr.msra.gmra.mrb[28].mxu1 %v7831_v26  ;;  %4637 = vmatpush1.bf16.msra.mxu0 %v6417_v50 }
 0x5d3   : > { %4668 = vmatprep.mubr.bf16.mxu0 %v7835_v28  ;;  %4638 = vmatprep.subr.bf16.mxu0 %v6422_v51  ;;  %v6426_v28 = vld [vmem:[%s8459_s11 + $0x438] ss:$28 sps:$4 sm:$0xff]  }
 0x5d6   : > { %4639 = vmatpush1.bf16.msra.mxu0 %v6420_v27 }
 0x5d7   : > { %4640 = vmatprep.subr.bf16.mxu0 %v6425_v52 }
 0x5da   : > { %4641 = vmatpush1.bf16.msra.mxu0 %v6423_v53 }
 0x5db   : > { %4642 = vmatprep.subr.bf16.mxu0 %v6428_v11 }
 0x5de   : > { %4643 = vmatpush1.bf16.msra.mxu0 %v6426_v28 }
 0x5df   : > { %4644 = vmatprep.subr.bf16.mxu0 %v6431_v54 }
 0x5e2   : > { %4645 = vmatpush1.bf16.msra.mxu0 %v6429_v55 }
 0x5e3   : > { %4646 = vmatprep.subr.bf16.mxu0 %v6434_v56 }
 0x5e6   : > { %4647 = vmatpush1.bf16.msra.mxu0 %v6432_v57 }
 0x5e7   : > { %4648 = vmatprep.subr.bf16.mxu0 %v6437_v58 }
 0x5ea   : > { %4649 = vmatpush1.bf16.msra.mxu0 %v6435_v59 }
 0x5eb   : > { %4650 = vmatprep.subr.bf16.mxu0 %v6440_v60 }
 0x5ee   : > { %4651 = vmatpush1.bf16.msra.mxu0 %v6438_v61 }
 0x5ef   : > { %4652 = vmatprep.subr.bf16.mxu0 %v6443_v62 }
 0x5f2   : > { %4653 = vmatpush1.bf16.msra.mxu0 %v6441_v63 }
 0x5f3   : > { %4654 = vmatprep.subr.bf16.mxu0 %v6446_v0 }
 0x5f6   : > { %4655 = vmatpush1.bf16.msra.mxu0 %v6444_v1 }
 0x5f7   : > { %4656 = vmatprep.subr.bf16.mxu0 %v6449_v2 }
 0x5fa   : > { %4657 = vmatpush1.bf16.msra.mxu0 %v6447_v3 }
 0x5fb   : > { %4658 = vmatprep.subr.bf16.mxu0 %v6452_v4 }
 0x5fe   : > { %4659 = vmatpush1.bf16.msra.mxu0 %v6450_v5 }
 0x5ff   : > { %4660 = vmatprep.subr.bf16.mxu0 %v6455_v6 }
 0x602   : > { %4661 = vmatpush1.bf16.msra.mxu0 %v6453_v7 }
 0x603   : > { %4662 = vmatprep.subr.bf16.mxu0 %v6458_v8 }
 0x606   : > { %4663 = vmatpush1.bf16.msra.mxu0 %v6456_v9 }
 0x607   : > { %4664 = vmatprep.subr.bf16.mxu0 %v6461_v10 }
 0x60a   : > { %4665 = vmatpush1.bf16.msra.mxu0 %v6459_v12 }
 0x60b   : > { %4666 = vmatprep.subr.bf16.mxu0 %v6464_v13 }
 0x60e   : > { %4667 = vmatpush1.bf16.msra.mxu0 %v6462_v14 }
 0x611   : > { %4669 = vmatmul.mubr.bf16.vlgmr.msra.gmra.mrb[16].mxu0 %v7831_v26 }
 0x664   : > { %v4498_v20 = vpop.f32.mrb[12].mxu0  ;;  %v4584_v21 = vpop.f32.mrb[20].mxu1 }
 0x665   : > { %v5643_v26 = vadd.f32 %v4498_v20, %v3237_v16  ;;  %v5647_v22 = vadd.f32 %v4584_v21, %v3245_v17  ;;  %v4500_v23 = vpop.f32.mrb[13].mxu0  ;;  %v4586_v24 = vpop.f32.mrb[21].mxu1 }
 0x666   : > { %v5644_v25 = vadd.f32 %v4500_v23, %v3241_v18  ;;  %v5648_v29 = vadd.f32 %v4586_v24, %v3249_v19  ;;  %v4502_v33 = vpop.f32.mrb[14].mxu0  ;;  %v4588_v36 = vpop.f32.mrb[22].mxu1 }
 0x667   : > { %v4761_v31 = vmul.f32 0.5, %v5643_v26  ;;  %v4763_v37 = vmul.f32 0.5, %v5647_v22  ;;  %v5645_v38 = vadd.f32 %v4502_v33, %v3237_v16  ;;  %v5649_v32 = vadd.f32 %v4588_v36, %v3245_v17  ;;  %v4504_v39 = vpop.f32.mrb[15].mxu0  ;;  %v4590_v40 = vpop.f32.mrb[23].mxu1 }
 0x668   : > { %v4762_v34 = vmul.f32 0.5, %v5644_v25  ;;  %v4764_v41 = vmul.f32 0.5, %v5648_v29  ;;  %v5646_v35 = vadd.f32 %v4504_v39, %v3241_v18  ;;  %v5650_v42 = vadd.f32 %v4590_v40, %v3249_v19 }
 0x669   : > { %6465 = vtanh.f32 %v4761_v31  ;;  %v4768_v43 = vmul.f32 0.5, %v5645_v38  ;;  %v4770_v44 = vmul.f32 0.5, %v5649_v32 }
 0x66a   : > { %6467 = vtanh.f32 %v4763_v37  ;;  %v4769_v45 = vmul.f32 0.5, %v5646_v35  ;;  %v4771_v46 = vmul.f32 0.5, %v5650_v42 }
 0x66b   : > { %6469 = vtanh.f32 %v4762_v34 }
 0x66c   : > { %6471 = vtanh.f32 %v4764_v41 }
 0x66d   : > { %6473 = vtanh.f32 %v4768_v43 }
 0x66e   : > { %6475 = vtanh.f32 %v4770_v44 }
 0x66f   : > { %6477 = vtanh.f32 %v4769_v45 }
 0x670   : > { %6479 = vtanh.f32 %v4771_v46 }
 0x673   : > { %v6466_v47 = vpop.eup %6465 }
 0x674   : > { %v6468_v48 = vpop.eup %6467  ;;  %v4789_v49 = vmul.f32 0.5, %v6466_v47 }
 0x675   : > { %v6470_v50 = vpop.eup %6469  ;;  %v4791_v51 = vmul.f32 0.5, %v6468_v48 }
 0x676   : > { %v6472_v27 = vpop.eup %6471  ;;  %v4803_v52 = vadd.f32 0.5, %v4789_v49  ;;  %v4790_v53 = vmul.f32 0.5, %v6470_v50 }
 0x677   : > { %v6474_v11 = vpop.eup %6473  ;;  %v4805_v28 = vadd.f32 0.5, %v4791_v51  ;;  %v4792_v54 = vmul.f32 0.5, %v6472_v27 }
 0x678   : > { %v6476_v55 = vpop.eup %6475  ;;  %4817 = vst [vmem:[%s8341_s24] sm:$0xff] %v4803_v52  ;;  %v4804_v56 = vadd.f32 0.5, %v4790_v53  ;;  %v4796_v57 = vmul.f32 0.5, %v6474_v11 }
 0x679   : > { %v6478_v58 = vpop.eup %6477  ;;  %4819 = vst [vmem:[%s8341_s24 + $0x10] sm:$0xff] %v4805_v28  ;;  %v4806_v59 = vadd.f32 0.5, %v4792_v54  ;;  %v4798_v60 = vmul.f32 0.5, %v6476_v55 }
 0x67a   : > { %v6480_v61 = vpop.eup %6479  ;;  %4818 = vst [vmem:[%s8341_s24 + $0x8] sm:$0xff] %v4804_v56  ;;  %v4810_v62 = vadd.f32 0.5, %v4796_v57  ;;  %v4797_v63 = vmul.f32 0.5, %v6478_v58 }
 0x67b   : > { %4820 = vst [vmem:[%s8341_s24 + $0x18] sm:$0xff] %v4806_v59  ;;  %v4812_v0 = vadd.f32 0.5, %v4798_v60  ;;  %v4799_v1 = vmul.f32 0.5, %v6480_v61 }
 0x67c   : > { %4824 = vst [vmem:[%s8341_s24 + $0x38] sm:$0xff] %v4810_v62  ;;  %v4811_v2 = vadd.f32 0.5, %v4797_v63 }
 0x67d   : > { %4826 = vst [vmem:[%s8341_s24 + $0x48] sm:$0xff] %v4812_v0  ;;  %v4813_v3 = vadd.f32 0.5, %v4799_v1 }
 0x67e   : > { %4825 = vst [vmem:[%s8341_s24 + $0x40] sm:$0xff] %v4811_v2 }
 0x67f   : > { %4827 = vst [vmem:[%s8341_s24 + $0x50] sm:$0xff] %v4813_v3 }
 0x680   : > { %6506 = shalt.err (!%p6503_p3)
}
 0x681   : > { %s6507_s27 = scalar_lea.hbm %s8357_s20, 256  ;;  %s6511_s21 = scalar_lea.hbm %s8462_s14, 1024 }
 0x682   : > { %p6508_p4 = scmp.ne.s32.totalorder %s8357_s20, %s6507_s27  ;;  %p6512_p9 = scmp.lt.u32.totalorder %s8357_s20, %s8462_s14 }
 0x683   : > { %p6513_p10 = scmp.lt.u32.totalorder %s6511_s21, %s6507_s27  ;;  %p6515_p12 = scmp.lt.u32.totalorder %s6507_s27, %s8357_s20 }
 0x684   : > { %p6509_p7 = pnand %p6508_p4, %p6711_p5 }
 0x685   : > { %p6514_p11 = por %p6513_p10, %p6512_p9 }
 0x686   : > { %p6510_p8 = pneg %p6509_p7 }
 0x687   : > { %p6516_p13 = por %p6515_p12, %p6514_p11 }
 0x689   : > { %p6517_p0 = pnand %p6516_p13, %p6510_p8 }
 0x68b   : > { %6520 = shalt.err (!%p6517_p0)
}
 0x68c   : > { %s6593_s22 = smov 128   ;;  %s6594_s28 = smov 8   ;;  %v5567_v4 = vpop.f32.mrb[24].mxu1  ;;  %v3260_v10 = vsub.s32 6, %v7377_v30  ;;  %v3252_v38 = vsub.s32 4, %v7377_v30  ;;  %v3256_v32 = vsub.s32 5, %v7377_v30 }
 0x68d   : > { %s8477_s0 = scalar_lea.sflag [#allocation5], %s7553_s18  ;;  %v5568_v5 = vpop.f32.mrb[25].mxu1  ;;  %s6595_s26 = smov [#allocation2]  }
 0x68e   : > { %5695 = dma.vmem_to_hbm [thread:$0]  (%p6711_p5), %s8348_s19, 256, %s8357_s20, %s8477_s0, %s6593_s22, %s6593_s22, %s6594_s28   ;;  %v5569_v6 = vadd.f32 %v5568_v5, %v5567_v4  ;;  %v5570_v7 = vpop.f32.mrb[26].mxu1  ;;  %v3261_v12 = vrot.slane %v8330_v15, %v3260_v10  ;;  %v3253_v39 = vrot.slane %v8330_v15, %v3252_v38  ;;  %v3257_v40 = vrot.slane %v8330_v15, %v3256_v32 }
 0x68f   : > { %v5571_v8 = vpop.f32.mrb[27].mxu1  ;;  %s4851_s0 = sshll.u32 %s8341_s24, 4  ;;  %s5693_s19 = smul.u32 1792, %s6694_s17  ;;  %s8396_s0 = int_to_ptr.vmem [resolvable:$true] %s4851_s0 }
 0x690   : > { %v5572_v9 = vadd.f32 %v5571_v8, %v5570_v7  ;;  %v4714_v16 = vadd.f32 %v5569_v6, %v3261_v12  ;;  %s4832_s17 = scalar_lea.sflag [#allocation3], %s7553_s18  ;;  %s6521_s25 = scalar_lea.vmem %s8396_s0, 1792 }
 0x691   : > { %s8403_s27 = scalar_lea.hbm %s8461_s13, %s5693_s19  ;;  %p6522_p1 = scmp.ne.s32.totalorder %s8396_s0, %s6521_s25 }
 0x692   : > { %v4717_v20 = vadd.f32 %v5572_v9, %v3261_v12  ;;  %s6525_s21 = sshll.u32 %s6595_s26, 4  ;;  %s6526_s21 = int_to_ptr.vmem [resolvable:$false] %s6525_s21 }
 0x693   : > { %p6523_p2 = pnand %p6522_p1, %p6711_p5  ;;  %s6527_s15 = scalar_lea.vmem %s6526_s21, 3584 }
 0x694   : > { %p6528_p4 = scmp.lt.s32.totalorder %s8396_s0, %s6526_s21  ;;  %p6529_p7 = scmp.lt.s32.totalorder %s6527_s15, %s6521_s25 }
 0x695   : > { %p6524_p3 = pneg %p6523_p2 }
 0x696   : > { %p6530_p8 = por %p6529_p7, %p6528_p4 }
 0x698   : > { %p6531_p9 = pnand %p6530_p8, %p6524_p3 }
 0x6a5   : > { %v5589_v13 = vpop.f32.mrb[28].mxu1 }
 0x6a6   : > { %v5590_v14 = vpop.f32.mrb[29].mxu1 }
 0x6a7   : > { %v5591_v17 = vadd.f32 %v5590_v14, %v5589_v13  ;;  %v5592_v18 = vpop.f32.mrb[30].mxu1 }
 0x6a8   : > { %v5593_v19 = vpop.f32.mrb[31].mxu1 }
 0x6a9   : > { %v4755_v21 = vadd.f32 %v5591_v17, %v4714_v16  ;;  %v5594_v26 = vadd.f32 %v5593_v19, %v5592_v18 }
 0x6ab   : > { %v4767_v22 = vmul.f32 0.5, %v4755_v21  ;;  %v4758_v23 = vadd.f32 %v5594_v26, %v4717_v20 }
 0x6ad   : > { %6481 = vtanh.f32 %v4767_v22  ;;  %v4774_v24 = vmul.f32 0.5, %v4758_v23 }
 0x6af   : > { %6483 = vtanh.f32 %v4774_v24 }
 0x6b7   : > { %v6482_v25 = vpop.eup %6481 }
 0x6b8   : > { %v4795_v29 = vmul.f32 0.5, %v6482_v25 }
 0x6b9   : > { %v6484_v33 = vpop.eup %6483 }
 0x6ba   : > { %v4809_v36 = vadd.f32 0.5, %v4795_v29  ;;  %v4802_v31 = vmul.f32 0.5, %v6484_v33 }
 0x6bc   : > { %4823 = vst.msk [vmem:[%s8341_s24 + $0x30] sm:$0xff] %vm1726_vm0, %v4809_v36  ;;  %v4816_v37 = vadd.f32 0.5, %v4802_v31 }
 0x6be   : > { %4830 = vst.msk [vmem:[%s8341_s24 + $0x68] sm:$0xff] %vm1726_vm0, %v4816_v37 }
 0x6e4   : > { %v4670_v34 = vpop.f32.mrb[16].mxu0 }
 0x6e5   : > { %v5651_v41 = vadd.f32 %v4670_v34, %v3253_v39  ;;  %v4672_v35 = vpop.f32.mrb[17].mxu0 }
 0x6e6   : > { %v5652_v42 = vadd.f32 %v4672_v35, %v3257_v40  ;;  %v4674_v43 = vpop.f32.mrb[18].mxu0 }
 0x6e7   : > { %v4765_v44 = vmul.f32 0.5, %v5651_v41  ;;  %v5653_v45 = vadd.f32 %v4674_v43, %v3253_v39  ;;  %v4676_v46 = vpop.f32.mrb[19].mxu0 }
 0x6e8   : > { %v4766_v47 = vmul.f32 0.5, %v5652_v42  ;;  %v5654_v48 = vadd.f32 %v4676_v46, %v3257_v40 }
 0x6e9   : > { %6485 = vtanh.f32 %v4765_v44  ;;  %v4772_v49 = vmul.f32 0.5, %v5653_v45 }
 0x6ea   : > { %6487 = vtanh.f32 %v4766_v47  ;;  %v4773_v30 = vmul.f32 0.5, %v5654_v48 }
 0x6eb   : > { %6489 = vtanh.f32 %v4772_v49 }
 0x6ec   : > { %6491 = vtanh.f32 %v4773_v30 }
 0x6f3   : > { %v6486_v15 = vpop.eup %6485 }
 0x6f4   : > { %v6488_v50 = vpop.eup %6487  ;;  %v4793_v51 = vmul.f32 0.5, %v6486_v15 }
 0x6f5   : > { %v6490_v27 = vpop.eup %6489  ;;  %v4794_v52 = vmul.f32 0.5, %v6488_v50 }
 0x6f6   : > { %v6492_v53 = vpop.eup %6491  ;;  %v4807_v11 = vadd.f32 0.5, %v4793_v51  ;;  %v4800_v28 = vmul.f32 0.5, %v6490_v27 }
 0x6f7   : > { %v4808_v54 = vadd.f32 0.5, %v4794_v52  ;;  %v4801_v55 = vmul.f32 0.5, %v6492_v53 }
 0x6f8   : > { %4821 = vst [vmem:[%s8341_s24 + $0x20] sm:$0xff] %v4807_v11  ;;  %v4814_v56 = vadd.f32 0.5, %v4800_v28 }
 0x6f9   : > { %4822 = vst [vmem:[%s8341_s24 + $0x28] sm:$0xff] %v4808_v54  ;;  %v4815_v57 = vadd.f32 0.5, %v4801_v55 }
 0x6fa   : > { %4828 = vst [vmem:[%s8341_s24 + $0x58] sm:$0xff] %v4814_v56 }
 0x6fb   : > { %4829 = vst [vmem:[%s8341_s24 + $0x60] sm:$0xff] %v4815_v57 }
 0x6fc   : > { %6534 = shalt.err (!%p6531_p9)
}
 0x6fd   : > { %s6535_s24 = scalar_lea.hbm %s8403_s27, 1792  ;;  %s6539_s19 = scalar_lea.hbm %s8461_s13, 7168 }
 0x6fe   : > { %p6536_p10 = scmp.ne.s32.totalorder %s8403_s27, %s6535_s24  ;;  %p6540_p13 = scmp.lt.u32.totalorder %s8403_s27, %s8461_s13 }
 0x6ff   : > { %p6541_p0 = scmp.lt.u32.totalorder %s6539_s19, %s6535_s24  ;;  %p6543_p2 = scmp.lt.u32.totalorder %s6535_s24, %s8403_s27 }
 0x700   : > { %p6537_p11 = pnand %p6536_p10, %p6711_p5 }
 0x701   : > { %p6542_p1 = por %p6541_p0, %p6540_p13 }
 0x702   : > { %p6538_p12 = pneg %p6537_p11 }
 0x703   : > { %p6544_p3 = por %p6543_p2, %p6542_p1 }
 0x705   : > { %p6545_p4 = pnand %p6544_p3, %p6538_p12 }
 0x707   : > { %6548 = shalt.err (!%p6545_p4)
}
 0x708   : > { %s6596_s25 = smov 896   ;;  %s6597_s26 = smov 56  }
 0x709   : > { %5694 = dma.vmem_to_hbm [thread:$0]  (%p6711_p5), %s8396_s0, 1792, %s8403_s27, %s4832_s17, %s6596_s25, %s6596_s25, %s6597_s26  }
 0x70a PF: > { %s8478_s21 = sld [smem:[#allocation8_spill]]  ;;  %p5705_p7 = scmp.ge.s32.totalorder %s6587_s16, 2 }
 0x70c   : > { %p5699_p8 = pnand %p5705_p7, %p6715_p6 }
 0x710   : > { %s4882_s22 = sand.u32 1, %s8478_s21  }
 0x711   : > { %s4883_s24 = scalar_lea.sflag [#allocation3], %s4882_s22 }
 0x712   : > { %6566 = dma.done.wait (!%p5699_p8), %s4883_s24, 1792  }
 0x713   : > { %6568 = vsyncadd (!%p5699_p8), %s4883_s24, 4294965504  ;;  %s4892_s28 = scalar_lea.sflag [#allocation5], %s4882_s22 }
 0x714   : > { %6570 = dma.done.wait (!%p5699_p8), %s4892_s28, 256  }
 0x715   : > { %6572 = vsyncadd (!%p5699_p8), %s4892_s28, 4294967040  ;;  %s8480_s16 = sld [smem:[#allocation10_spill]]  ;;  %s8481_s19 = sld [smem:[#allocation9_spill]] }
 0x716   : > { %s8482_s15 = sld [smem:[#allocation11_spill]]  ;;  %s8483_s29 = smov %s6579_s30 }
 0x71b   : > { %p28_p5 = scmp.ge.s32.totalorder %s8480_s16, 6   ;;  %s8484_s30 = smov %s8481_s19 }
 0x71d   :  { %30 = sbr.rel (!%p28_p5) target bundleno = 7 (0x7), region = 124 }
 0x724   :  { %4897 = vsyncpa [#allocation3], 1 }
 0x725   :  { %4899 = vsyncpa [#allocation3 + $0x1], 1 }
 0x726   :  { %4900 = vsyncpa [#allocation5], 1 }
 0x727   :  { %4902 = vsyncpa [#allocation5 + $0x1], 1 }

</bundles_post_ra>
